<compile_context>
chip_gen: v6e
topology: v6e:2x2x1
jax: 0.10.0
libtpu: 0.0.40
codegen_flags: <defaults>
</compile_context>

<pallas_src>
import functools

import jax
import jax.numpy as jnp
from jax.experimental import pallas as pl
from jax.experimental.pallas import tpu as pltpu


def _round_up(n: int, m: int) -> int:
    return ((n + m - 1) // m) * m


def mlp_kernel(x_ref, w1_ref, b1_ref, w2_ref, b2_ref, w3_ref, b3_ref, o_ref):
    # fc1 + ReLU  (bf16 MXU matmul, f32 accumulation; biases kept in f32)
    h1 = jnp.dot(x_ref[...], w1_ref[...], preferred_element_type=jnp.float32)
    h1 = jnp.maximum(h1 + b1_ref[...], 0.0).astype(w2_ref.dtype)
    # fc2 + ReLU
    h2 = jnp.dot(h1, w2_ref[...], preferred_element_type=jnp.float32)
    h2 = jnp.maximum(h2 + b2_ref[...], 0.0).astype(w3_ref.dtype)
    # fc3 (logits, no activation)
    h3 = jnp.dot(h2, w3_ref[...], preferred_element_type=jnp.float32)
    o_ref[...] = (h3 + b3_ref[...]).astype(o_ref.dtype)


@functools.partial(jax.jit, static_argnames=("tile_b", "param_dtype"))
def mlp_forward(x, w1, b1, w2, b2, w3, b3, *, tile_b=256, param_dtype=jnp.bfloat16):
    B, d_in = x.shape
    h1_dim = w1.shape[1]            # 256 (already a multiple of 128)
    h2_dim = w2.shape[1]            # 64
    out_dim = w3.shape[1]           # 10

    # --- lane-dense padding of feature dims (all become multiples of 128) ---
    d_in_p = _round_up(d_in, 128)       # 784 -> 896
    h2_p = _round_up(h2_dim, 128)       # 64  -> 128
    out_p = _round_up(out_dim, 128)     # 10  -> 128

    # --- batch tiling (pad B up to a multiple of the tile) ---
    tile_b = min(tile_b, _round_up(B, 8))
    B_p = _round_up(B, tile_b)
    n_tiles = B_p // tile_b

    # Pad + cast (zero padding is exact: padded rows/cols contribute nothing,
    # padded biases are zero so padded ReLU outputs stay zero).
    x_p = jnp.pad(x, ((0, B_p - B), (0, d_in_p - d_in))).astype(param_dtype)
    w1_p = jnp.pad(w1, ((0, d_in_p - d_in), (0, 0))).astype(param_dtype)
    w2_p = jnp.pad(w2, ((0, 0), (0, h2_p - h2_dim))).astype(param_dtype)
    w3_p = jnp.pad(w3, ((0, h2_p - h2_dim), (0, out_p - out_dim))).astype(param_dtype)
    b1_p = b1.astype(jnp.float32)
    b2_p = jnp.pad(b2, ((0, 0), (0, h2_p - h2_dim))).astype(jnp.float32)
    b3_p = jnp.pad(b3, ((0, 0), (0, out_p - out_dim))).astype(jnp.float32)

    resident = lambda shape: pl.BlockSpec(shape, lambda i: (0,) * len(shape))

    flops = 2 * B_p * (d_in_p * h1_dim + h1_dim * h2_p + h2_p * out_p)
    bytes_accessed = (
        x_p.size * x_p.dtype.itemsize
        + sum(a.size * a.dtype.itemsize
              for a in (w1_p, b1_p, w2_p, b2_p, w3_p, b3_p))
        + B_p * out_p * 4
    )

    out_p_arr = pl.pallas_call(
        mlp_kernel,
        out_shape=jax.ShapeDtypeStruct((B_p, out_p), jnp.float32),
        grid=(n_tiles,),
        in_specs=[
            pl.BlockSpec((tile_b, d_in_p), lambda i: (i, 0)),   # x: tiled over batch
            resident(w1_p.shape), resident(b1_p.shape),         # weights/biases stay
            resident(w2_p.shape), resident(b2_p.shape),         # resident in VMEM
            resident(w3_p.shape), resident(b3_p.shape),
        ],
        out_specs=pl.BlockSpec((tile_b, out_p), lambda i: (i, 0)),
        compiler_params=pltpu.CompilerParams(
            dimension_semantics=("parallel",),
        ),
        cost_estimate=pl.CostEstimate(
            flops=flops, transcendentals=0, bytes_accessed=bytes_accessed),
    )(x_p, w1_p, b1_p, w2_p, b2_p, w3_p, b3_p)

    # Strip batch/output padding.
    return out_p_arr[:B, :out_dim]


def init_params(key):
    # Deterministic init mimicking nn.Linear default (uniform +/- 1/sqrt(fan_in)).
    dims = [(28 * 28, 256), (256, 64), (64, 10)]
    params = []
    for fan_in, fan_out in dims:
        kw, kb, key = jax.random.split(key, 3)
        bound = 1.0 / jnp.sqrt(jnp.float32(fan_in))
        w = jax.random.uniform(kw, (fan_in, fan_out), jnp.float32, -bound, bound)
        b = jax.random.uniform(kb, (1, fan_out), jnp.float32, -bound, bound)
        params += [w, b]
    return params


def ref_forward(x, w1, b1, w2, b2, w3, b3, dtype=jnp.bfloat16):
    # Plain-JAX reference using the same bf16-weights / f32-accumulation recipe.
    h = jnp.dot(x.astype(dtype), w1.astype(dtype),
                preferred_element_type=jnp.float32) + b1
    h = jnp.maximum(h, 0.0).astype(dtype)
    h = jnp.dot(h, w2.astype(dtype),
                preferred_element_type=jnp.float32) + b2
    h = jnp.maximum(h, 0.0).astype(dtype)
    return jnp.dot(h, w3.astype(dtype),
                   preferred_element_type=jnp.float32) + b3


if __name__ == "__main__":
    key = jax.random.PRNGKey(0)
    kx, kp = jax.random.split(key)

    B = 256  # batched so the MXU actually gets fed; tile_b=128 -> grid of 2
    x = jax.random.normal(kx, (B, 28 * 28), jnp.float32)  # flattened MNIST images

    w1, b1, w2, b2, w3, b3 = init_params(kp)

    out = mlp_forward(x, w1, b1, w2, b2, w3, b3, tile_b=128)
    out = jax.block_until_ready(out)

    ref = ref_forward(x, w1, b1, w2, b2, w3, b3)
    assert out.shape == (B, 10)
    assert jnp.allclose(out, ref, atol=5e-2, rtol=5e-2), (
        float(jnp.max(jnp.abs(out - ref))))

    print("KERNEL_OK")
</pallas_src>

<mosaic_0001>
module attributes {stable_mosaic.version = 11 : i64} {
  func.func @mlp_kernel(%arg0: i32, %arg1: memref<128x896xbf16, #tpu.memory_space<vmem>>, %arg2: memref<896x256xbf16, #tpu.memory_space<vmem>>, %arg3: memref<1x256xf32, #tpu.memory_space<vmem>>, %arg4: memref<256x128xbf16, #tpu.memory_space<vmem>>, %arg5: memref<1x128xf32, #tpu.memory_space<vmem>>, %arg6: memref<128x128xbf16, #tpu.memory_space<vmem>>, %arg7: memref<1x128xf32, #tpu.memory_space<vmem>>, %arg8: memref<128x128xf32, #tpu.memory_space<vmem>>) attributes {dimension_semantics = [#tpu.dimension_semantics<parallel>], iteration_bounds = array<i64: 2>, scalar_prefetch = 0 : i64, scratch_operands = 0 : i64, tpu.core_type = #tpu.core_type<tc>, window_params = [{transform_indices = @transform_0, window_bounds = array<i64: 128, 896>}, {pipeline_mode = #tpu.pipeline_mode<synchronous>, transform_indices = @transform_1, window_bounds = array<i64: 896, 256>}, {pipeline_mode = #tpu.pipeline_mode<synchronous>, transform_indices = @transform_2, window_bounds = array<i64: 1, 256>}, {pipeline_mode = #tpu.pipeline_mode<synchronous>, transform_indices = @transform_3, window_bounds = array<i64: 256, 128>}, {pipeline_mode = #tpu.pipeline_mode<synchronous>, transform_indices = @transform_4, window_bounds = array<i64: 1, 128>}, {pipeline_mode = #tpu.pipeline_mode<synchronous>, transform_indices = @transform_5, window_bounds = array<i64: 128, 128>}, {pipeline_mode = #tpu.pipeline_mode<synchronous>, transform_indices = @transform_6, window_bounds = array<i64: 1, 128>}, {transform_indices = @transform_7, window_bounds = array<i64: 128, 128>}]} {
    %c0 = arith.constant 0 : index
    %c0_0 = arith.constant 0 : index
    %0 = vector.load %arg1[%c0, %c0_0] : memref<128x896xbf16, #tpu.memory_space<vmem>>, vector<128x896xbf16>
    %c0_1 = arith.constant 0 : index
    %c0_2 = arith.constant 0 : index
    %1 = vector.load %arg2[%c0_1, %c0_2] : memref<896x256xbf16, #tpu.memory_space<vmem>>, vector<896x256xbf16>
    %cst = arith.constant dense<0.000000e+00> : vector<128x256xf32>
    %2 = tpu.matmul %0, %1, %cst {dimension_numbers = #tpu.dot_dimension_numbers<[1], [0], [0], [1], [0, 0, 1, 1], [], []>} : vector<128x896xbf16>, vector<896x256xbf16>, vector<128x256xf32> -> vector<128x256xf32>
    %c0_3 = arith.constant 0 : index
    %c0_4 = arith.constant 0 : index
    %3 = vector.load %arg3[%c0_3, %c0_4] : memref<1x256xf32, #tpu.memory_space<vmem>>, vector<1x256xf32>
    %4 = vector.broadcast %3 : vector<1x256xf32> to vector<128x256xf32>
    %5 = arith.addf %2, %4 : vector<128x256xf32>
    %cst_5 = arith.constant 0.000000e+00 : f32
    %6 = vector.broadcast %cst_5 : f32 to vector<128x256xf32>
    %7 = arith.maximumf %5, %6 : vector<128x256xf32>
    %8 = arith.truncf %7 : vector<128x256xf32> to vector<128x256xbf16>
    %c0_6 = arith.constant 0 : index
    %c0_7 = arith.constant 0 : index
    %9 = vector.load %arg4[%c0_6, %c0_7] : memref<256x128xbf16, #tpu.memory_space<vmem>>, vector<256x128xbf16>
    %cst_8 = arith.constant dense<0.000000e+00> : vector<128x128xf32>
    %10 = tpu.matmul %8, %9, %cst_8 {dimension_numbers = #tpu.dot_dimension_numbers<[1], [0], [0], [1], [0, 0, 1, 1], [], []>} : vector<128x256xbf16>, vector<256x128xbf16>, vector<128x128xf32> -> vector<128x128xf32>
    %c0_9 = arith.constant 0 : index
    %c0_10 = arith.constant 0 : index
    %11 = vector.load %arg5[%c0_9, %c0_10] : memref<1x128xf32, #tpu.memory_space<vmem>>, vector<1x128xf32>
    %12 = vector.broadcast %11 : vector<1x128xf32> to vector<128x128xf32>
    %13 = arith.addf %10, %12 : vector<128x128xf32>
    %cst_11 = arith.constant 0.000000e+00 : f32
    %14 = vector.broadcast %cst_11 : f32 to vector<128x128xf32>
    %15 = arith.maximumf %13, %14 : vector<128x128xf32>
    %16 = arith.truncf %15 : vector<128x128xf32> to vector<128x128xbf16>
    %c0_12 = arith.constant 0 : index
    %c0_13 = arith.constant 0 : index
    %17 = vector.load %arg6[%c0_12, %c0_13] : memref<128x128xbf16, #tpu.memory_space<vmem>>, vector<128x128xbf16>
    %cst_14 = arith.constant dense<0.000000e+00> : vector<128x128xf32>
    %18 = tpu.matmul %16, %17, %cst_14 {dimension_numbers = #tpu.dot_dimension_numbers<[1], [0], [0], [1], [0, 0, 1, 1], [], []>} : vector<128x128xbf16>, vector<128x128xbf16>, vector<128x128xf32> -> vector<128x128xf32>
    %c0_15 = arith.constant 0 : index
    %c0_16 = arith.constant 0 : index
    %19 = vector.load %arg7[%c0_15, %c0_16] : memref<1x128xf32, #tpu.memory_space<vmem>>, vector<1x128xf32>
    %20 = vector.broadcast %19 : vector<1x128xf32> to vector<128x128xf32>
    %21 = arith.addf %18, %20 : vector<128x128xf32>
    %c0_17 = arith.constant 0 : index
    %c0_18 = arith.constant 0 : index
    %22 = vector.load %arg8[%c0_17, %c0_18] : memref<128x128xf32, #tpu.memory_space<vmem>>, vector<128x128xf32>
    tpu.vector_store %arg8[%c0_17, %c0_18], %21 {strides = array<i32>} : memref<128x128xf32, #tpu.memory_space<vmem>>, vector<128x128xf32>,
    return
  }
  func.func @transform_0(%arg0: i32) -> (i32, i32) {
    %c0_i32 = arith.constant 0 : i32
    %c0_i32_0 = arith.constant 0 : i32
    return %arg0, %c0_i32 : i32, i32
  }
  func.func @transform_1(%arg0: i32) -> (i32, i32) {
    %c0_i32 = arith.constant 0 : i32
    %c0_i32_0 = arith.constant 0 : i32
    %c0_i32_1 = arith.constant 0 : i32
    return %c0_i32, %c0_i32_0 : i32, i32
  }
  func.func @transform_2(%arg0: i32) -> (i32, i32) {
    %c0_i32 = arith.constant 0 : i32
    %c0_i32_0 = arith.constant 0 : i32
    %c0_i32_1 = arith.constant 0 : i32
    return %c0_i32, %c0_i32_0 : i32, i32
  }
  func.func @transform_3(%arg0: i32) -> (i32, i32) {
    %c0_i32 = arith.constant 0 : i32
    %c0_i32_0 = arith.constant 0 : i32
    %c0_i32_1 = arith.constant 0 : i32
    return %c0_i32, %c0_i32_0 : i32, i32
  }
  func.func @transform_4(%arg0: i32) -> (i32, i32) {
    %c0_i32 = arith.constant 0 : i32
    %c0_i32_0 = arith.constant 0 : i32
    %c0_i32_1 = arith.constant 0 : i32
    return %c0_i32, %c0_i32_0 : i32, i32
  }
  func.func @transform_5(%arg0: i32) -> (i32, i32) {
    %c0_i32 = arith.constant 0 : i32
    %c0_i32_0 = arith.constant 0 : i32
    %c0_i32_1 = arith.constant 0 : i32
    return %c0_i32, %c0_i32_0 : i32, i32
  }
  func.func @transform_6(%arg0: i32) -> (i32, i32) {
    %c0_i32 = arith.constant 0 : i32
    %c0_i32_0 = arith.constant 0 : i32
    %c0_i32_1 = arith.constant 0 : i32
    return %c0_i32, %c0_i32_0 : i32, i32
  }
  func.func @transform_7(%arg0: i32) -> (i32, i32) {
    %c0_i32 = arith.constant 0 : i32
    %c0_i32_0 = arith.constant 0 : i32
    return %arg0, %c0_i32 : i32, i32
  }
}

</mosaic_0001>

<bundles_post_ra>
// kernel: mlp_forward.1
= control target key start
LH: loop header
LB: loop body
LE: loop exit
PB: predicated region body
PF: predicated region fallthrough
CT: control target
= control target key end

     0   :  { %s2966_s24 = smov 0   ;;  %s3688_s0 = inlined_call_operand.vmem [shape: bf16[256,896], index: 0, kind: input, shape index: {}]   ;;  %s3689_s1 = inlined_call_operand.vmem [shape: bf16[896,256], index: 1, kind: input, shape index: {}]   ;;  %s3690_s2 = inlined_call_operand.vmem [shape: f32[1,256], index: 2, kind: input, shape index: {}]   ;;  %s3691_s3 = inlined_call_operand.vmem [shape: bf16[256,128], index: 3, kind: input, shape index: {}]   ;;  %s3692_s4 = inlined_call_operand.vmem [shape: f32[1,128], index: 4, kind: input, shape index: {}]   ;;  %s3693_s5 = inlined_call_operand.vmem [shape: bf16[128,128], index: 5, kind: input, shape index: {}]   ;;  %s3694_s6 = inlined_call_operand.vmem [shape: f32[1,128], index: 6, kind: input, shape index: {}]   ;;  %s3695_s7 = inlined_call_operand.vmem [shape: f32[256,128], index: 7, kind: output, shape index: {}]  }
   0x1 LB: > { %s2318_s25 = sadd.s32 4294967295, %s2923_s24   ;;  %p2322_p0 = scmp.ge.s32.totalorder %s2923_s24, 1  ;;  %s2923_s24 = sphi %s2966_s24, %s17_s24  }
   0x2   : > { %p239_p1 = scmp.lt.s32.totalorder %s2923_s24, 3 }
   0x4   : > { %p240_p2 = pnand %p2322_p0, %p239_p1 }
   0x6   : > { %243 = sbr.rel (%p240_p2) target bundleno = 813 (0x32d), region = 48 }
   0xb   : > { %v2645_v0 = vld [vmem:[%s3689_s1 + $0x74] ss:$8 sps:$4 sm:$0xff]   ;;  %v2649_v2 = vld [vmem:[%s3689_s1 + $0x70] ss:$8 sps:$4 sm:$0xff]   ;;  %v2651_v4 = vld [vmem:[%s3689_s1 + $0x64] ss:$8 sps:$4 sm:$0xff]  }
   0xc   : > { %v2647_v1 = vld [vmem:[%s3689_s1 + $0x174] ss:$8 sps:$4 sm:$0xff]   ;;  %1322 = vmatprep.subr.bf16.mxu0 %v2645_v0  ;;  %v2650_v3 = vld [vmem:[%s3689_s1 + $0x170] ss:$8 sps:$4 sm:$0xff]   ;;  %v2653_v5 = vld [vmem:[%s3689_s1 + $0x164] ss:$8 sps:$4 sm:$0xff]  }
   0xd   : > { %1435 = vmatprep.subr.bf16.mxu1 %v2647_v1  ;;  %1323 = vmatpush1.bf16.msra.mxu0 %v2649_v2  ;;  %v2655_v6 = vld [vmem:[%s3689_s1 + $0x60] ss:$8 sps:$4 sm:$0xff]   ;;  %v2657_v8 = vld [vmem:[%s3689_s1 + $0x54] ss:$8 sps:$4 sm:$0xff]   ;;  %v2661_v10 = vld [vmem:[%s3689_s1 + $0x50] ss:$8 sps:$4 sm:$0xff]  }
   0xe   : > { %1436 = vmatpush1.bf16.msra.mxu1 %v2650_v3  ;;  %1324 = vmatprep.subr.bf16.mxu0 %v2651_v4  ;;  %v2656_v7 = vld [vmem:[%s3689_s1 + $0x160] ss:$8 sps:$4 sm:$0xff]   ;;  %v2659_v9 = vld [vmem:[%s3689_s1 + $0x154] ss:$8 sps:$4 sm:$0xff]   ;;  %v2662_v11 = vld [vmem:[%s3689_s1 + $0x150] ss:$8 sps:$4 sm:$0xff]  }
   0xf   : > { %1437 = vmatprep.subr.bf16.mxu1 %v2653_v5  ;;  %v2663_v12 = vld [vmem:[%s3689_s1 + $0x44] ss:$8 sps:$4 sm:$0xff]   ;;  %v2667_v14 = vld [vmem:[%s3689_s1 + $0x40] ss:$8 sps:$4 sm:$0xff]   ;;  %v2669_v16 = vld [vmem:[%s3689_s1 + $0x34] ss:$8 sps:$4 sm:$0xff]  }
  0x10   : > { %v2665_v13 = vld [vmem:[%s3689_s1 + $0x144] ss:$8 sps:$4 sm:$0xff]   ;;  %v2668_v15 = vld [vmem:[%s3689_s1 + $0x140] ss:$8 sps:$4 sm:$0xff]   ;;  %v2671_v17 = vld [vmem:[%s3689_s1 + $0x134] ss:$8 sps:$4 sm:$0xff]  }
  0x11   : > { %1325 = vmatpush1.bf16.msra.mxu0 %v2655_v6  ;;  %v2673_v18 = vld [vmem:[%s3689_s1 + $0x30] ss:$8 sps:$4 sm:$0xff]   ;;  %v2675_v20 = vld [vmem:[%s3689_s1 + $0x24] ss:$8 sps:$4 sm:$0xff]   ;;  %v2679_v22 = vld [vmem:[%s3689_s1 + $0x20] ss:$8 sps:$4 sm:$0xff]  }
  0x12   : > { %1438 = vmatpush1.bf16.msra.mxu1 %v2656_v7  ;;  %1326 = vmatprep.subr.bf16.mxu0 %v2657_v8  ;;  %v2674_v19 = vld [vmem:[%s3689_s1 + $0x130] ss:$8 sps:$4 sm:$0xff]   ;;  %v2677_v21 = vld [vmem:[%s3689_s1 + $0x124] ss:$8 sps:$4 sm:$0xff]   ;;  %v2680_v23 = vld [vmem:[%s3689_s1 + $0x120] ss:$8 sps:$4 sm:$0xff]  }
  0x13   : > { %1439 = vmatprep.subr.bf16.mxu1 %v2659_v9  ;;  %v2681_v24 = vld [vmem:[%s3689_s1 + $0x14] ss:$8 sps:$4 sm:$0xff]   ;;  %v2685_v26 = vld [vmem:[%s3689_s1 + $0x10] ss:$8 sps:$4 sm:$0xff]   ;;  %v2687_v28 = vld [vmem:[%s3689_s1 + $0x4] ss:$8 sps:$4 sm:$0xff]  }
  0x14   : > { %v2683_v25 = vld [vmem:[%s3689_s1 + $0x114] ss:$8 sps:$4 sm:$0xff]   ;;  %v2686_v27 = vld [vmem:[%s3689_s1 + $0x110] ss:$8 sps:$4 sm:$0xff]   ;;  %v2689_v29 = vld [vmem:[%s3689_s1 + $0x104] ss:$8 sps:$4 sm:$0xff]  }
  0x15   : > { %1327 = vmatpush1.bf16.msra.mxu0 %v2661_v10  ;;  %s2323_s21 = sshll.u32 %s2318_s25, 4  ;;  %v2691_v30 = vld [vmem:[%s3689_s1] ss:$8 sps:$4 sm:$0xff]   ;;  %v2693_v32 = vld [vmem:[%s3689_s1 + $0xf4] ss:$8 sps:$4 sm:$0xff]  }
  0x16   : > { %1440 = vmatpush1.bf16.msra.mxu1 %v2662_v11  ;;  %1328 = vmatprep.subr.bf16.mxu0 %v2663_v12  ;;  %v2692_v31 = vld [vmem:[%s3689_s1 + $0x100] ss:$8 sps:$4 sm:$0xff]   ;;  %p273_p3 = scmp.lt.s32.totalorder %s2323_s21, 31  ;;  %v2695_v33 = vld [vmem:[%s3689_s1 + $0x1f4] ss:$8 sps:$4 sm:$0xff]  }
  0x17   : > { %1441 = vmatprep.subr.bf16.mxu1 %v2665_v13  ;;  %v2697_v34 = vld [vmem:[%s3689_s1 + $0xf0] ss:$8 sps:$4 sm:$0xff]   ;;  %v2699_v36 = vld [vmem:[%s3689_s1 + $0xe4] ss:$8 sps:$4 sm:$0xff]   ;;  %v2703_v38 = vld [vmem:[%s3689_s1 + $0xe0] ss:$8 sps:$4 sm:$0xff]  }
  0x18   : > { %v2698_v35 = vld [vmem:[%s3689_s1 + $0x1f0] ss:$8 sps:$4 sm:$0xff]   ;;  %s3707_s21 = smov (!%p273_p3, %s2323_s21), 31  ;;  %v2701_v37 = vld [vmem:[%s3689_s1 + $0x1e4] ss:$8 sps:$4 sm:$0xff]  }
  0x19   : > { %1329 = vmatpush1.bf16.msra.mxu0 %v2667_v14  ;;  %v2704_v39 = vld [vmem:[%s3689_s1 + $0x1e0] ss:$8 sps:$4 sm:$0xff]   ;;  %v2705_v40 = vld [vmem:[%s3689_s1 + $0xd4] ss:$8 sps:$4 sm:$0xff]   ;;  %s2635_s23 = smul.u32 28, %s3707_s21  ;;  %s2326_s17 = sshll.u32 %s3707_s21, 3 }
  0x1a   : > { %1442 = vmatpush1.bf16.msra.mxu1 %v2668_v15  ;;  %1330 = vmatprep.subr.bf16.mxu0 %v2669_v16  ;;  %v2707_v41 = vld [vmem:[%s3689_s1 + $0x1d4] ss:$8 sps:$4 sm:$0xff]   ;;  %v2709_v42 = vld [vmem:[%s3689_s1 + $0xd0] ss:$8 sps:$4 sm:$0xff]   ;;  %v2711_v44 = vld [vmem:[%s3689_s1 + $0xc4] ss:$8 sps:$4 sm:$0xff]  }
  0x1b   : > { %1443 = vmatprep.subr.bf16.mxu1 %v2671_v17  ;;  %v2710_v43 = vld [vmem:[%s3689_s1 + $0x1d0] ss:$8 sps:$4 sm:$0xff]   ;;  %s3117_s12 = scalar_lea.vmem %s3688_s0, %s2635_s23  ;;  %v2713_v45 = vld [vmem:[%s3689_s1 + $0x1c4] ss:$8 sps:$4 sm:$0xff]   ;;  %v2715_v46 = vld [vmem:[%s3689_s1 + $0xc0] ss:$8 sps:$4 sm:$0xff]   ;;  %s3667_s23 = scalar_lea.vmem %s3695_s7, %s2326_s17 }
  0x1c   : > { %v2716_v47 = vld [vmem:[%s3689_s1 + $0x1c0] ss:$8 sps:$4 sm:$0xff]   ;;  %v2717_v48 = vld [vmem:[%s3689_s1 + $0xb4] ss:$8 sps:$4 sm:$0xff]   ;;  %v2721_v52 = vld [vmem:[%s3689_s1 + $0xb0] ss:$8 sps:$4 sm:$0xff]  }
  0x1d   : > { %1331 = vmatpush1.bf16.msra.mxu0 %v2673_v18  ;;  %v2743_v49 = vld [vmem:[%s3117_s12 + $0x4] ss:$28 sps:$4 sm:$0xff]   ;;  %v2719_v50 = vld [vmem:[%s3689_s1 + $0x1b4] ss:$8 sps:$4 sm:$0xff]   ;;  %v2746_v51 = vld [vmem:[%s3117_s12 + $0xc] ss:$28 sps:$4 sm:$0xff]  }
  0x1e   : > { %1444 = vmatpush1.bf16.msra.mxu1 %v2674_v19  ;;  %1332 = vmatprep.subr.bf16.mxu0 %v2675_v20  ;;  %v2722_v53 = vld [vmem:[%s3689_s1 + $0x1b0] ss:$8 sps:$4 sm:$0xff]   ;;  %v2723_v54 = vld [vmem:[%s3689_s1 + $0xa4] ss:$8 sps:$4 sm:$0xff]   ;;  %v2727_v56 = vld [vmem:[%s3689_s1 + $0xa0] ss:$8 sps:$4 sm:$0xff]  }
  0x1f   : > { %1445 = vmatprep.subr.bf16.mxu1 %v2677_v21  ;;  %1354 = vmatprep.mubr.bf16.mxu0 %v2743_v49  ;;  %v2725_v55 = vld [vmem:[%s3689_s1 + $0x1a4] ss:$8 sps:$4 sm:$0xff]   ;;  %v2728_v57 = vld [vmem:[%s3689_s1 + $0x1a0] ss:$8 sps:$4 sm:$0xff]   ;;  %v2729_v58 = vld [vmem:[%s3689_s1 + $0x94] ss:$8 sps:$4 sm:$0xff]  }
  0x20   : > { %1467 = vmatprep.mubr.bf16.mxu1 %v2746_v51  ;;  %v2731_v59 = vld [vmem:[%s3689_s1 + $0x194] ss:$8 sps:$4 sm:$0xff]   ;;  %v2733_v60 = vld [vmem:[%s3689_s1 + $0x90] ss:$8 sps:$4 sm:$0xff]   ;;  %v2735_v62 = vld [vmem:[%s3689_s1 + $0x84] ss:$8 sps:$4 sm:$0xff]  }
  0x21   : > { %1333 = vmatpush1.bf16.msra.mxu0 %v2679_v22  ;;  %v2734_v61 = vld [vmem:[%s3689_s1 + $0x190] ss:$8 sps:$4 sm:$0xff]   ;;  %v2737_v63 = vld [vmem:[%s3689_s1 + $0x184] ss:$8 sps:$4 sm:$0xff]   ;;  %v2739_v0 = vld [vmem:[%s3689_s1 + $0x80] ss:$8 sps:$4 sm:$0xff]  }
  0x22   : > { %1446 = vmatpush1.bf16.msra.mxu1 %v2680_v23  ;;  %1334 = vmatprep.subr.bf16.mxu0 %v2681_v24  ;;  %v2740_v1 = vld [vmem:[%s3689_s1 + $0x180] ss:$8 sps:$4 sm:$0xff]   ;;  %v2749_v2 = vld [vmem:[%s3689_s1 + $0x274] ss:$8 sps:$4 sm:$0xff]   ;;  %v2747_v6 = vld [vmem:[%s3689_s1 + $0x270] ss:$8 sps:$4 sm:$0xff]  }
  0x23   : > { %1447 = vmatprep.subr.bf16.mxu1 %v2683_v25  ;;  %v2752_v3 = vld [vmem:[%s3689_s1 + $0x374] ss:$8 sps:$4 sm:$0xff]   ;;  %v2744_v5 = vld [vmem:[%s3117_s12 + $0x8] ss:$28 sps:$4 sm:$0xff]   ;;  %v2750_v7 = vld [vmem:[%s3689_s1 + $0x370] ss:$8 sps:$4 sm:$0xff]  }
  0x24   : > { %v2741_v4 = vld [vmem:[%s3117_s12] ss:$28 sps:$4 sm:$0xff]   ;;  %v2755_v8 = vld [vmem:[%s3689_s1 + $0x264] ss:$8 sps:$4 sm:$0xff]   ;;  %v2760_v16 = vld [vmem:[%s3117_s12 + $0x38] ss:$28 sps:$4 sm:$0xff]  }
  0x25   : > { %1335 = vmatpush1.bf16.msra.mxu0 %v2685_v26  ;;  %v2756_v9 = vld [vmem:[%s3117_s12 + $0x3c] ss:$28 sps:$4 sm:$0xff]   ;;  %v2758_v10 = vld [vmem:[%s3117_s12 + $0x44] ss:$28 sps:$4 sm:$0xff]   ;;  %v2771_v20 = vld [vmem:[%s3117_s12 + $0x74] ss:$28 sps:$4 sm:$0xff]  }
  0x26   : > { %1448 = vmatpush1.bf16.msra.mxu1 %v2686_v27  ;;  %1336 = vmatprep.subr.bf16.mxu0 %v2687_v28  ;;  %v2767_v11 = vld [vmem:[%s3689_s1 + $0x364] ss:$8 sps:$4 sm:$0xff]   ;;  %v2753_v12 = vld [vmem:[%s3689_s1 + $0x260] ss:$8 sps:$4 sm:$0xff]   ;;  %v2764_v13 = vld [vmem:[%s3689_s1 + $0x254] ss:$8 sps:$4 sm:$0xff]  }
  0x27   : > { %1449 = vmatprep.subr.bf16.mxu1 %v2689_v29  ;;  %v2765_v14 = vld [vmem:[%s3689_s1 + $0x360] ss:$8 sps:$4 sm:$0xff]   ;;  %v2782_v15 = vld [vmem:[%s3689_s1 + $0x354] ss:$8 sps:$4 sm:$0xff]   ;;  %v2762_v18 = vld [vmem:[%s3689_s1 + $0x250] ss:$8 sps:$4 sm:$0xff]  }
  0x28   : > { %v2761_v17 = vld [vmem:[%s3117_s12 + $0x40] ss:$28 sps:$4 sm:$0xff]   ;;  %v2770_v19 = vld [vmem:[%s3689_s1 + $0x244] ss:$8 sps:$4 sm:$0xff]   ;;  %v2780_v22 = vld [vmem:[%s3689_s1 + $0x350] ss:$8 sps:$4 sm:$0xff]  }
  0x29   : > { %1337 = vmatpush1.bf16.msra.mxu0 %v2691_v30  ;;  %v2773_v21 = vld [vmem:[%s3117_s12 + $0x7c] ss:$28 sps:$4 sm:$0xff]   ;;  %v2797_v23 = vld [vmem:[%s3689_s1 + $0x344] ss:$8 sps:$4 sm:$0xff]   ;;  %v2768_v24 = vld [vmem:[%s3689_s1 + $0x240] ss:$8 sps:$4 sm:$0xff]  }
  0x2a   : > { %1450 = vmatpush1.bf16.msra.mxu1 %v2692_v31  ;;  %1338 = vmatprep.subr.bf16.mxu0 %v2693_v32  ;;  %v2775_v25 = vld [vmem:[%s3117_s12 + $0x70] ss:$28 sps:$4 sm:$0xff]   ;;  %v2779_v26 = vld [vmem:[%s3689_s1 + $0x234] ss:$8 sps:$4 sm:$0xff]   ;;  %v2795_v28 = vld [vmem:[%s3689_s1 + $0x340] ss:$8 sps:$4 sm:$0xff]  }
  0x2b   : > { %1451 = vmatprep.subr.bf16.mxu1 %v2695_v33  ;;  %v2776_v27 = vld [vmem:[%s3117_s12 + $0x78] ss:$28 sps:$4 sm:$0xff]   ;;  %v2785_v30 = vld [vmem:[%s3689_s1 + $0x224] ss:$8 sps:$4 sm:$0xff]  }
  0x2c   : > { %v2777_v29 = vld [vmem:[%s3689_s1 + $0x230] ss:$8 sps:$4 sm:$0xff]   ;;  %v2786_v31 = vld [vmem:[%s3117_s12 + $0xac] ss:$28 sps:$4 sm:$0xff]   ;;  %v2812_v33 = vld [vmem:[%s3689_s1 + $0x334] ss:$8 sps:$4 sm:$0xff]  }
  0x2d   : > { %1339 = vmatpush2.bf16.msra.mxu0 %v2697_v34  ;;  %v2788_v32 = vld [vmem:[%s3117_s12 + $0xb4] ss:$28 sps:$4 sm:$0xff]   ;;  %v2806_v49 = vld [vmem:[%s3117_s12 + $0xe8] ss:$28 sps:$4 sm:$0xff]  }
  0x2e   : > { %1452 = vmatpush2.bf16.msra.mxu1 %v2698_v35  ;;  %1340 = vmatprep.subr.bf16.mxu0 %v2699_v36  ;;  %v2810_v34 = vld [vmem:[%s3689_s1 + $0x330] ss:$8 sps:$4 sm:$0xff]   ;;  %v2783_v35 = vld [vmem:[%s3689_s1 + $0x220] ss:$8 sps:$4 sm:$0xff]   ;;  %v2827_v36 = vld [vmem:[%s3689_s1 + $0x324] ss:$8 sps:$4 sm:$0xff]  }
  0x2f   : > { %1453 = vmatprep.subr.bf16.mxu1 %v2701_v37  ;;  %v2794_v37 = vld [vmem:[%s3689_s1 + $0x214] ss:$8 sps:$4 sm:$0xff]   ;;  %v2807_v51 = vld [vmem:[%s3689_s1 + $0x2f0] ss:$8 sps:$4 sm:$0xff]  }
  0x31   : > { %1341 = vmatpush2.bf16.msra.mxu0 %v2703_v38  ;;  %v2790_v38 = vld [vmem:[%s3117_s12 + $0xa8] ss:$28 sps:$4 sm:$0xff]  }
  0x32   : > { %1454 = vmatpush2.bf16.msra.mxu1 %v2704_v39  ;;  %1342 = vmatprep.subr.bf16.mxu0 %v2705_v40  ;;  %v2791_v39 = vld [vmem:[%s3117_s12 + $0xb0] ss:$28 sps:$4 sm:$0xff]  }
  0x33   : > { %1455 = vmatprep.subr.bf16.mxu1 %v2707_v41  ;;  %v2792_v40 = vld [vmem:[%s3689_s1 + $0x210] ss:$8 sps:$4 sm:$0xff]   ;;  %v2800_v41 = vld [vmem:[%s3689_s1 + $0x204] ss:$8 sps:$4 sm:$0xff]  }
  0x35   : > { %1343 = vmatpush2.bf16.msra.mxu0 %v2709_v42  ;;  %v2801_v42 = vld [vmem:[%s3117_s12 + $0xe4] ss:$28 sps:$4 sm:$0xff]  }
  0x36   : > { %1456 = vmatpush2.bf16.msra.mxu1 %v2710_v43  ;;  %1344 = vmatprep.subr.bf16.mxu0 %v2711_v44  ;;  %v2803_v43 = vld [vmem:[%s3117_s12 + $0xec] ss:$28 sps:$4 sm:$0xff]  }
  0x37   : > { %1457 = vmatprep.subr.bf16.mxu1 %v2713_v45  ;;  %v2825_v44 = vld [vmem:[%s3689_s1 + $0x320] ss:$8 sps:$4 sm:$0xff]   ;;  %v2842_v45 = vld [vmem:[%s3689_s1 + $0x314] ss:$8 sps:$4 sm:$0xff]  }
  0x39   : > { %1345 = vmatpush2.bf16.msra.mxu0 %v2715_v46  ;;  %v2798_v46 = vld [vmem:[%s3689_s1 + $0x200] ss:$8 sps:$4 sm:$0xff]  }
  0x3a   : > { %1458 = vmatpush2.bf16.msra.mxu1 %v2716_v47  ;;  %1346 = vmatprep.subr.bf16.mxu0 %v2717_v48  ;;  %v2805_v47 = vld [vmem:[%s3117_s12 + $0xe0] ss:$28 sps:$4 sm:$0xff]  }
  0x3b   : > { %1459 = vmatprep.subr.bf16.mxu1 %v2719_v50  ;;  %v2809_v48 = vld [vmem:[%s3689_s1 + $0x2f4] ss:$8 sps:$4 sm:$0xff]   ;;  %v2840_v50 = vld [vmem:[%s3689_s1 + $0x310] ss:$8 sps:$4 sm:$0xff]  }
  0x3d   : > { %1347 = vmatpush2.bf16.msra.mxu0 %v2721_v52  ;;  %v2815_v52 = vld [vmem:[%s3689_s1 + $0x2e4] ss:$8 sps:$4 sm:$0xff]  }
  0x3e   : > { %1460 = vmatpush2.bf16.msra.mxu1 %v2722_v53  ;;  %1348 = vmatprep.subr.bf16.mxu0 %v2723_v54  ;;  %v2816_v53 = vld [vmem:[%s3117_s12 + $0x11c] ss:$28 sps:$4 sm:$0xff]   ;;  %v2818_v54 = vld [vmem:[%s3117_s12 + $0x124] ss:$28 sps:$4 sm:$0xff]  }
  0x3f   : > { %1461 = vmatprep.subr.bf16.mxu1 %v2725_v55  ;;  %v2857_v55 = vld [vmem:[%s3689_s1 + $0x304] ss:$8 sps:$4 sm:$0xff]  }
  0x41   : > { %1349 = vmatpush2.bf16.msra.mxu0 %v2727_v56  ;;  %v2855_v56 = vld [vmem:[%s3689_s1 + $0x300] ss:$8 sps:$4 sm:$0xff]  }
  0x42   : > { %1462 = vmatpush2.bf16.msra.mxu1 %v2728_v57  ;;  %1350 = vmatprep.subr.bf16.mxu0 %v2729_v58  ;;  %v2813_v57 = vld [vmem:[%s3689_s1 + $0x2e0] ss:$8 sps:$4 sm:$0xff]   ;;  %v2820_v58 = vld [vmem:[%s3117_s12 + $0x118] ss:$28 sps:$4 sm:$0xff]  }
  0x43   : > { %1463 = vmatprep.subr.bf16.mxu1 %v2731_v59  ;;  %v2821_v59 = vld [vmem:[%s3117_s12 + $0x120] ss:$28 sps:$4 sm:$0xff]  }
  0x45   : > { %1351 = vmatpush2.bf16.msra.mxu0 %v2733_v60  ;;  %v2824_v60 = vld [vmem:[%s3689_s1 + $0x2d4] ss:$8 sps:$4 sm:$0xff]  }
  0x46   : > { %1464 = vmatpush2.bf16.msra.mxu1 %v2734_v61  ;;  %1352 = vmatprep.subr.bf16.mxu0 %v2735_v62  ;;  %v2822_v61 = vld [vmem:[%s3689_s1 + $0x2d0] ss:$8 sps:$4 sm:$0xff]   ;;  %v2830_v62 = vld [vmem:[%s3689_s1 + $0x2c4] ss:$8 sps:$4 sm:$0xff]  }
  0x47   : > { %1465 = vmatprep.subr.bf16.mxu1 %v2737_v63  ;;  %v2831_v63 = vld [vmem:[%s3117_s12 + $0x154] ss:$28 sps:$4 sm:$0xff]  }
  0x49   : > { %1353 = vmatpush2.bf16.msra.mxu0 %v2739_v0  ;;  %v2833_v0 = vld [vmem:[%s3117_s12 + $0x15c] ss:$28 sps:$4 sm:$0xff]  }
  0x4a   : > { %1466 = vmatpush2.bf16.msra.mxu1 %v2740_v1  ;;  %1548 = vmatprep.subr.bf16.mxu0 %v2749_v2  ;;  %v2828_v1 = vld [vmem:[%s3689_s1 + $0x2c0] ss:$8 sps:$4 sm:$0xff]   ;;  %v2835_v2 = vld [vmem:[%s3117_s12 + $0x150] ss:$28 sps:$4 sm:$0xff]  }
  0x4b   : > { %1661 = vmatprep.subr.bf16.mxu1 %v2752_v3  ;;  %v2839_v3 = vld [vmem:[%s3689_s1 + $0x2b4] ss:$8 sps:$4 sm:$0xff]  }
  0x4c   : > { %1355 = vmatmul.mubr.bf16.vlgmr.msra.gmra.mxu0 %v2741_v4  ;;  %v2836_v4 = vld [vmem:[%s3117_s12 + $0x158] ss:$28 sps:$4 sm:$0xff]  }
  0x4d   : > { %1468 = vmatmul.mubr.bf16.vlgmr.msra.gmra.mxu1 %v2744_v5  ;;  %1549 = vmatpush1.bf16.msra.mxu0 %v2747_v6  ;;  %v2837_v5 = vld [vmem:[%s3689_s1 + $0x2b0] ss:$8 sps:$4 sm:$0xff]   ;;  %v2846_v6 = vld [vmem:[%s3117_s12 + $0x18c] ss:$28 sps:$4 sm:$0xff]  }
  0x4e   : > { %1662 = vmatpush1.bf16.msra.mxu1 %v2750_v7  ;;  %1550 = vmatprep.subr.bf16.mxu0 %v2755_v8  ;;  %v2845_v7 = vld [vmem:[%s3689_s1 + $0x2a4] ss:$8 sps:$4 sm:$0xff]   ;;  %v2848_v8 = vld [vmem:[%s3117_s12 + $0x194] ss:$28 sps:$4 sm:$0xff]  }
  0x4f   : > { %1364 = vmatprep.mubr.bf16.mxu0 %v2756_v9  ;;  %1477 = vmatprep.mubr.bf16.mxu1 %v2758_v10  ;;  %v2843_v9 = vld [vmem:[%s3689_s1 + $0x2a0] ss:$8 sps:$4 sm:$0xff]   ;;  %v2854_v10 = vld [vmem:[%s3689_s1 + $0x294] ss:$8 sps:$4 sm:$0xff]  }
  0x50   : > { %1663 = vmatprep.subr.bf16.mxu1 %v2767_v11  ;;  %v2850_v11 = vld [vmem:[%s3117_s12 + $0x188] ss:$28 sps:$4 sm:$0xff]  }
  0x51   : > { %1551 = vmatpush1.bf16.msra.mxu0 %v2753_v12  ;;  %v2851_v12 = vld [vmem:[%s3117_s12 + $0x190] ss:$28 sps:$4 sm:$0xff]  }
  0x52   : > { %1664 = vmatpush1.bf16.msra.mxu1 %v2765_v14  ;;  %1552 = vmatprep.subr.bf16.mxu0 %v2764_v13  ;;  %v2852_v13 = vld [vmem:[%s3689_s1 + $0x290] ss:$8 sps:$4 sm:$0xff]  }
  0x53   : > { %1665 = vmatprep.subr.bf16.mxu1 %v2782_v15  ;;  %v2863_v14 = vld [vmem:[%s3117_s12 + $0x14] ss:$28 sps:$4 sm:$0xff]   ;;  %v2860_v15 = vld [vmem:[%s3689_s1 + $0x284] ss:$8 sps:$4 sm:$0xff]  }
  0x54   : > { %1365 = vmatmul.mubr.bf16.gmra.mxu0 %v2760_v16  ;;  %v2858_v16 = vld [vmem:[%s3689_s1 + $0x280] ss:$8 sps:$4 sm:$0xff]  }
  0x55   : > { %1478 = vmatmul.mubr.bf16.gmra.mxu1 %v2761_v17  ;;  %1553 = vmatpush1.bf16.msra.mxu0 %v2762_v18  ;;  %v2861_v17 = vld [vmem:[%s3117_s12 + $0x10] ss:$28 sps:$4 sm:$0xff]   ;;  %v2925_v18 = vmov 0  }
  0x56   : > { %1374 = vmatprep.mubr.bf16.mxu0 %v2771_v20  ;;  %1554 = vmatprep.subr.bf16.mxu0 %v2770_v19  ;;  %v2864_v19 = vld [vmem:[%s3117_s12 + $0x18] ss:$28 sps:$4 sm:$0xff]   ;;  %v2865_v20 = vld [vmem:[%s3117_s12 + $0x4c] ss:$28 sps:$4 sm:$0xff]  }
  0x57   : > { %1487 = vmatprep.mubr.bf16.mxu1 %v2773_v21  ;;  %1666 = vmatpush1.bf16.msra.mxu1 %v2780_v22  ;;  %v2867_v21 = vld [vmem:[%s3117_s12 + $0x48] ss:$28 sps:$4 sm:$0xff]   ;;  %v2868_v22 = vld [vmem:[%s3117_s12 + $0x50] ss:$28 sps:$4 sm:$0xff]  }
  0x58   : > { %1667 = vmatprep.subr.bf16.mxu1 %v2797_v23  ;;  %v2869_v23 = vld [vmem:[%s3117_s12 + $0x84] ss:$28 sps:$4 sm:$0xff]  }
  0x59   : > { %1555 = vmatpush1.bf16.msra.mxu0 %v2768_v24  ;;  %v2871_v24 = vld [vmem:[%s3117_s12 + $0x80] ss:$28 sps:$4 sm:$0xff]  }
  0x5a   : > { %1556 = vmatprep.subr.bf16.mxu0 %v2779_v26  ;;  %v2873_v26 = vld [vmem:[%s3117_s12 + $0xbc] ss:$28 sps:$4 sm:$0xff]  }
  0x5b   : > { %1668 = vmatpush1.bf16.msra.mxu1 %v2795_v28  ;;  %v2894_v28 = vld [vmem:[%s3691_s3 + $0x38] sm:$0xff]  }
  0x5c   : > { %1375 = vmatmul.mubr.bf16.gmra.mxu0 %v2775_v25  ;;  %1669 = vmatprep.subr.bf16.mxu1 %v2812_v33  ;;  %v2872_v25 = vld [vmem:[%s3117_s12 + $0x88] ss:$28 sps:$4 sm:$0xff]   ;;  %v2896_v33 = vld [vmem:[%s3691_s3 + $0x30] sm:$0xff]  }
  0x5d   : > { %1488 = vmatmul.mubr.bf16.gmra.mxu1 %v2776_v27  ;;  %1557 = vmatpush1.bf16.msra.mxu0 %v2777_v29  ;;  %v2893_v27 = vld [vmem:[%s3691_s3 + $0x78] sm:$0xff]  }
  0x5e   : > { %1384 = vmatprep.mubr.bf16.mxu0 %v2786_v31  ;;  %1558 = vmatprep.subr.bf16.mxu0 %v2785_v30  ;;  %v2875_v29 = vld [vmem:[%s3117_s12 + $0xb8] ss:$28 sps:$4 sm:$0xff]   ;;  %v2876_v30 = vld [vmem:[%s3117_s12 + $0xc0] ss:$28 sps:$4 sm:$0xff]  }
  0x5f   : > { %1497 = vmatprep.mubr.bf16.mxu1 %v2788_v32  ;;  %1670 = vmatpush1.bf16.msra.mxu1 %v2810_v34  ;;  %v2877_v31 = vld [vmem:[%s3117_s12 + $0xf4] ss:$28 sps:$4 sm:$0xff]  }
  0x60   : > { %1671 = vmatprep.subr.bf16.mxu1 %v2827_v36  ;;  %v2895_v32 = vld [vmem:[%s3691_s3 + $0x70] sm:$0xff]   ;;  %v2881_v36 = vld [vmem:[%s3117_s12 + $0x12c] ss:$28 sps:$4 sm:$0xff]  }
  0x61   : > { %1559 = vmatpush1.bf16.msra.mxu0 %v2783_v35  ;;  %v2879_v34 = vld [vmem:[%s3117_s12 + $0xf0] ss:$28 sps:$4 sm:$0xff]   ;;  %v2880_v35 = vld [vmem:[%s3117_s12 + $0xf8] ss:$28 sps:$4 sm:$0xff]  }
  0x62   : > { %1560 = vmatprep.subr.bf16.mxu0 %v2794_v37  ;;  %v2897_v37 = vld [vmem:[%s3691_s3 + $0x68] sm:$0xff]  }
  0x63   : > { %1672 = vmatpush1.bf16.msra.mxu1 %v2825_v44  ;;  %v2887_v44 = vld [vmem:[%s3117_s12 + $0x160] ss:$28 sps:$4 sm:$0xff]  }
  0x64   : > { %1385 = vmatmul.mubr.bf16.gmra.mxu0 %v2790_v38  ;;  %1673 = vmatprep.subr.bf16.mxu1 %v2842_v45  ;;  %v2898_v38 = vld [vmem:[%s3691_s3 + $0x28] sm:$0xff]  }
  0x65   : > { %1498 = vmatmul.mubr.bf16.gmra.mxu1 %v2791_v39  ;;  %1561 = vmatpush1.bf16.msra.mxu0 %v2792_v40  ;;  %v2883_v39 = vld [vmem:[%s3117_s12 + $0x128] ss:$28 sps:$4 sm:$0xff]   ;;  %v2884_v40 = vld [vmem:[%s3117_s12 + $0x130] ss:$28 sps:$4 sm:$0xff]  }
  0x66   : > { %1394 = vmatprep.mubr.bf16.mxu0 %v2801_v42  ;;  %1562 = vmatprep.subr.bf16.mxu0 %v2800_v41  ;;  %v2885_v41 = vld [vmem:[%s3117_s12 + $0x164] ss:$28 sps:$4 sm:$0xff]  }
  0x67   : > { %1507 = vmatprep.mubr.bf16.mxu1 %v2803_v43  ;;  %1674 = vmatpush1.bf16.msra.mxu1 %v2840_v50  ;;  %v2899_v42 = vld [vmem:[%s3691_s3 + $0x60] sm:$0xff]  }
  0x68   : > { %1675 = vmatprep.subr.bf16.mxu1 %v2857_v55  ;;  %v2900_v43 = vld [vmem:[%s3691_s3 + $0x20] sm:$0xff]  }
  0x69   : > { %1563 = vmatpush1.bf16.msra.mxu0 %v2798_v46  ;;  %v2888_v45 = vld [vmem:[%s3117_s12 + $0x168] ss:$28 sps:$4 sm:$0xff]   ;;  %v2889_v46 = vld [vmem:[%s3117_s12 + $0x19c] ss:$28 sps:$4 sm:$0xff]  }
  0x6a   : > { %1564 = vmatprep.subr.bf16.mxu0 %v2809_v48  ;;  %v2902_v48 = vld [vmem:[%s3691_s3 + $0x18] sm:$0xff]   ;;  %v2907_v55 = vld [vmem:[%s3691_s3 + $0x40] sm:$0xff]  }
  0x6b   : > { %1676 = vmatpush1.bf16.msra.mxu1 %v2855_v56  ;;  %v2892_v50 = vld [vmem:[%s3117_s12 + $0x1a0] ss:$28 sps:$4 sm:$0xff]  }
  0x6c   : > { %1395 = vmatmul.mubr.bf16.gmra.mxu0 %v2805_v47  ;;  %v2901_v47 = vld [vmem:[%s3691_s3 + $0x58] sm:$0xff]   ;;  %v2908_v56 = vld [vmem:[%s3691_s3] sm:$0xff]  }
  0x6d   : > { %1508 = vmatmul.mubr.bf16.gmra.mxu1 %v2806_v49  ;;  %1565 = vmatpush2.bf16.msra.mxu0 %v2807_v51  ;;  %v2891_v49 = vld [vmem:[%s3117_s12 + $0x198] ss:$28 sps:$4 sm:$0xff]  }
  0x6e   : > { %1404 = vmatprep.mubr.bf16.mxu0 %v2816_v53  ;;  %1566 = vmatprep.subr.bf16.mxu0 %v2815_v52  ;;  %v2903_v51 = vld [vmem:[%s3691_s3 + $0x50] sm:$0xff]   ;;  %v2905_v53 = vld [vmem:[%s3691_s3 + $0x48] sm:$0xff]  }
  0x6f   : > { %1517 = vmatprep.mubr.bf16.mxu1 %v2818_v54  ;;  %v2904_v52 = vld [vmem:[%s3691_s3 + $0x10] sm:$0xff]   ;;  %v2906_v54 = vld [vmem:[%s3691_s3 + $0x8] sm:$0xff]  }
  0x71   : > { %1567 = vmatpush2.bf16.msra.mxu0 %v2813_v57  ;;  %v464_v57 = vlaneseq }
  0x72   : > { %1568 = vmatprep.subr.bf16.mxu0 %v2824_v60  ;;  %v462_v60 = vld [vmem:[%s3690_s2] sm:$0x3] }
  0x74   : > { %1405 = vmatmul.mubr.bf16.gmra.mxu0 %v2820_v58  ;;  %v465_v58 = vshrl.u32 %v464_v57, 7 }
  0x75   : > { %1518 = vmatmul.mubr.bf16.gmra.mxu1 %v2821_v59  ;;  %1569 = vmatpush2.bf16.msra.mxu0 %v2822_v61 }
  0x76   : > { %1414 = vmatprep.mubr.bf16.mxu0 %v2831_v63  ;;  %1570 = vmatprep.subr.bf16.mxu0 %v2830_v62  ;;  %v466_v59 = vsub.s32 0, %v465_v58  ;;  %v470_v61 = vsub.s32 1, %v465_v58 }
  0x77   : > { %1527 = vmatprep.mubr.bf16.mxu1 %v2833_v0 }
  0x78   : > { %v3435_v62 = vrot.slane %v462_v60, %v466_v59  ;;  %v3437_v63 = vrot.slane %v462_v60, %v470_v61 }
  0x79   : > { %1571 = vmatpush2.bf16.msra.mxu0 %v2828_v1 }
  0x7a   : > { %1572 = vmatprep.subr.bf16.mxu0 %v2839_v3 }
  0x7c   : > { %1415 = vmatmul.mubr.bf16.gmra.mxu0 %v2835_v2 }
  0x7d   : > { %1528 = vmatmul.mubr.bf16.gmra.mxu1 %v2836_v4  ;;  %1573 = vmatpush2.bf16.msra.mxu0 %v2837_v5 }
  0x7e   : > { %1424 = vmatprep.mubr.bf16.mxu0 %v2846_v6  ;;  %1574 = vmatprep.subr.bf16.mxu0 %v2845_v7 }
  0x7f   : > { %1537 = vmatprep.mubr.bf16.mxu1 %v2848_v8 }
  0x81   : > { %1575 = vmatpush2.bf16.msra.mxu0 %v2843_v9 }
  0x82   : > { %1576 = vmatprep.subr.bf16.mxu0 %v2854_v10 }
  0x84   : > { %1425 = vmatmul.mubr.bf16.gmra.mxu0 %v2850_v11 }
  0x85   : > { %1538 = vmatmul.mubr.bf16.gmra.mxu1 %v2851_v12  ;;  %1577 = vmatpush2.bf16.msra.mxu0 %v2852_v13 }
  0x86   : > { %1580 = vmatprep.mubr.bf16.mxu0 %v2863_v14  ;;  %1578 = vmatprep.subr.bf16.mxu0 %v2860_v15  ;;  %v2909_v14 = vld [vmem:[%s3693_s5 + $0x38] sm:$0xff]   ;;  %v2910_v15 = vld [vmem:[%s3693_s5 + $0x30] sm:$0xff]  }
  0x87   : > { %1693 = vmatprep.mubr.bf16.mxu1 %v2925_v18  ;;  %2603 = vmatprep.subr.bf16.mxu1 %v2909_v14 }
  0x89   : > { %1579 = vmatpush2.bf16.msra.mxu0 %v2858_v16 }
  0x8a   : > { %2523 = vmatprep.subr.bf16.mxu0 %v2893_v27 }
  0x8c   : > { %1581 = vmatmul.mubr.bf16.vlgmr.msra.gmra.mxu0 %v2861_v17 }
  0x8d   : > { %1694 = vmatmul.mubr.bf16.vlgmr.msra.gmra.mxu1 %v2864_v19  ;;  %1590 = vmatprep.mubr.bf16.mxu0 %v2865_v20 }
  0x8e   : > { %1703 = vmatprep.mubr.bf16.mxu1 %v2925_v18  ;;  %2524 = vmatpush3.bf16.msra.mxu0 %v2894_v28 }
  0x8f   : > { %2525 = vmatprep.subr.bf16.mxu0 %v2895_v32  ;;  %2604 = vmatpush3.bf16.msra.mxu1 %v2909_v14 }
  0x90   : > { %2605 = vmatprep.subr.bf16.mxu1 %v2910_v15 }
  0x92   : > { %2526 = vmatpush3.bf16.msra.mxu0 %v2896_v33 }
  0x93   : > { %2527 = vmatprep.subr.bf16.mxu0 %v2897_v37  ;;  %2606 = vmatpush3.bf16.msra.mxu1 %v2910_v15 }
  0x94   : > { %1591 = vmatmul.mubr.bf16.gmra.mxu0 %v2867_v21 }
  0x95   : > { %1704 = vmatmul.mubr.bf16.gmra.mxu1 %v2868_v22  ;;  %1600 = vmatprep.mubr.bf16.mxu0 %v2869_v23  ;;  %v2911_v23 = vld [vmem:[%s3693_s5 + $0x28] sm:$0xff]  }
  0x96   : > { %1713 = vmatprep.mubr.bf16.mxu1 %v2925_v18  ;;  %2528 = vmatpush3.bf16.msra.mxu0 %v2898_v38 }
  0x97   : > { %2529 = vmatprep.subr.bf16.mxu0 %v2899_v42  ;;  %2607 = vmatprep.subr.bf16.mxu1 %v2911_v23 }
  0x98   : > { %2608 = vmatpush3.bf16.msra.mxu1 %v2911_v23 }
  0x9a   : > { %2530 = vmatpush3.bf16.msra.mxu0 %v2900_v43 }
  0x9b   : > { %2531 = vmatprep.subr.bf16.mxu0 %v2901_v47 }
  0x9c   : > { %1601 = vmatmul.mubr.bf16.gmra.mxu0 %v2871_v24 }
  0x9d   : > { %1714 = vmatmul.mubr.bf16.gmra.mxu1 %v2872_v25  ;;  %1610 = vmatprep.mubr.bf16.mxu0 %v2873_v26 }
  0x9e   : > { %1723 = vmatprep.mubr.bf16.mxu1 %v2925_v18  ;;  %2532 = vmatpush3.bf16.msra.mxu0 %v2902_v48 }
  0x9f   : > { %2533 = vmatprep.subr.bf16.mxu0 %v2903_v51 }
  0xa2   : > { %2534 = vmatpush3.bf16.msra.mxu0 %v2904_v52 }
  0xa3   : > { %2535 = vmatprep.subr.bf16.mxu0 %v2905_v53 }
  0xa4   : > { %1611 = vmatmul.mubr.bf16.gmra.mxu0 %v2875_v29 }
  0xa5   : > { %1724 = vmatmul.mubr.bf16.gmra.mxu1 %v2876_v30  ;;  %1620 = vmatprep.mubr.bf16.mxu0 %v2877_v31 }
  0xa6   : > { %1733 = vmatprep.mubr.bf16.mxu1 %v2925_v18  ;;  %2536 = vmatpush3.bf16.msra.mxu0 %v2906_v54 }
  0xa7   : > { %2537 = vmatprep.subr.bf16.mxu0 %v2907_v55 }
  0xaa   : > { %2538 = vmatpush3.bf16.msra.mxu0 %v2908_v56 }
  0xac   : > { %1621 = vmatmul.mubr.bf16.gmra.mxu0 %v2879_v34 }
  0xad   : > { %1734 = vmatmul.mubr.bf16.gmra.mxu1 %v2880_v35  ;;  %1630 = vmatprep.mubr.bf16.mxu0 %v2881_v36 }
  0xae   : > { %1743 = vmatprep.mubr.bf16.mxu1 %v2925_v18 }
  0xb4   : > { %1631 = vmatmul.mubr.bf16.gmra.mxu0 %v2883_v39 }
  0xb5   : > { %1744 = vmatmul.mubr.bf16.gmra.mxu1 %v2884_v40  ;;  %1640 = vmatprep.mubr.bf16.mxu0 %v2885_v41 }
  0xb6   : > { %1753 = vmatprep.mubr.bf16.mxu1 %v2925_v18 }
  0xbc   : > { %1641 = vmatmul.mubr.bf16.gmra.mxu0 %v2887_v44 }
  0xbd   : > { %1754 = vmatmul.mubr.bf16.gmra.mxu1 %v2888_v45  ;;  %1650 = vmatprep.mubr.bf16.mxu0 %v2889_v46 }
  0xbe   : > { %1763 = vmatprep.mubr.bf16.mxu1 %v2925_v18 }
  0xc4   : > { %1651 = vmatmul.mubr.bf16.gmra.mxu0 %v2891_v49 }
  0xc5   : > { %1764 = vmatmul.mubr.bf16.gmra.mxu1 %v2892_v50 }
 0x10c   : > { %v1356_v0 = vpop.f32.mrf.mxu0 }
 0x10d   : > { %v1469_v1 = vpop.f32.mrf.mxu1  ;;  %v1357_v2 = vadd.f32 %v1356_v0, %v3435_v62 }
 0x10e   : > { %v1358_v3 = vpop.f32.mrf.mxu0 }
 0x10f   : > { %v1471_v4 = vpop.f32.mrf.mxu1  ;;  %v3440_v5 = vadd.f32 %v1469_v1, %v1357_v2  ;;  %v1359_v6 = vadd.f32 %v1358_v3, %v3437_v63 }
 0x110   : > { %v3443_v7 = vpop.f32.mrf.mxu0 }
 0x111   : > { %v3445_v8 = vpop.f32.mrf.mxu1  ;;  %v3447_v9 = vadd.f32 %v1471_v4, %v1359_v6 }
 0x112   : > { %v3449_v10 = vpop.f32.mrf.mxu0 }
 0x113   : > { %v3451_v11 = vpop.f32.mrf.mxu1 }
 0x114   : > { %v1366_v12 = vpop.f32.mrf.mxu0 }
 0x115   : > { %v1479_v13 = vpop.f32.mrf.mxu1  ;;  %v1367_v16 = vadd.f32 %v1366_v12, %v3435_v62 }
 0x116   : > { %v1368_v17 = vpop.f32.mrf.mxu0 }
 0x117   : > { %v1481_v18 = vpop.f32.mrf.mxu1  ;;  %v3460_v19 = vadd.f32 %v1479_v13, %v1367_v16  ;;  %v1369_v20 = vadd.f32 %v1368_v17, %v3437_v63 }
 0x118   : > { %v3463_v21 = vpop.f32.mrf.mxu0 }
 0x119   : > { %v3465_v22 = vpop.f32.mrf.mxu1  ;;  %v3470_v24 = vadd.f32 %v1481_v18, %v1369_v20 }
 0x11a   : > { %v3472_v25 = vpop.f32.mrf.mxu0 }
 0x11b   : > { %v3474_v26 = vpop.f32.mrf.mxu1 }
 0x11c   : > { %v1376_v27 = vpop.f32.mrf.mxu0 }
 0x11d   : > { %v1489_v28 = vpop.f32.mrf.mxu1  ;;  %v1377_v29 = vadd.f32 %v1376_v27, %v3435_v62 }
 0x11e   : > { %v1378_v30 = vpop.f32.mrf.mxu0 }
 0x11f   : > { %v1491_v31 = vpop.f32.mrf.mxu1  ;;  %v3477_v32 = vadd.f32 %v1489_v28, %v1377_v29  ;;  %v1379_v33 = vadd.f32 %v1378_v30, %v3437_v63 }
 0x120   : > { %v3480_v34 = vpop.f32.mrf.mxu0 }
 0x121   : > { %v3482_v35 = vpop.f32.mrf.mxu1  ;;  %v3484_v36 = vadd.f32 %v1491_v31, %v1379_v33 }
 0x122   : > { %v3486_v37 = vpop.f32.mrf.mxu0 }
 0x123   : > { %v3488_v38 = vpop.f32.mrf.mxu1 }
 0x124   : > { %v1386_v39 = vpop.f32.mrf.mxu0 }
 0x125   : > { %v1499_v40 = vpop.f32.mrf.mxu1  ;;  %v1387_v41 = vadd.f32 %v1386_v39, %v3435_v62 }
 0x126   : > { %v1388_v42 = vpop.f32.mrf.mxu0 }
 0x127   : > { %v1501_v43 = vpop.f32.mrf.mxu1  ;;  %v3491_v44 = vadd.f32 %v1499_v40, %v1387_v41  ;;  %v1389_v45 = vadd.f32 %v1388_v42, %v3437_v63 }
 0x128   : > { %v3494_v46 = vpop.f32.mrf.mxu0 }
 0x129   : > { %v3496_v47 = vpop.f32.mrf.mxu1  ;;  %v3498_v48 = vadd.f32 %v1501_v43, %v1389_v45 }
 0x12a   : > { %v3500_v49 = vpop.f32.mrf.mxu0 }
 0x12b   : > { %v3502_v50 = vpop.f32.mrf.mxu1 }
 0x12c   : > { %v1396_v51 = vpop.f32.mrf.mxu0 }
 0x12d   : > { %v1509_v52 = vpop.f32.mrf.mxu1  ;;  %v1397_v53 = vadd.f32 %v1396_v51, %v3435_v62 }
 0x12e   : > { %v1398_v54 = vpop.f32.mrf.mxu0 }
 0x12f   : > { %v1511_v55 = vpop.f32.mrf.mxu1  ;;  %v3505_v56 = vadd.f32 %v1509_v52, %v1397_v53  ;;  %v1399_v57 = vadd.f32 %v1398_v54, %v3437_v63 }
 0x130   : > { %v3508_v58 = vpop.f32.mrf.mxu0 }
 0x131   : > { %v3510_v59 = vpop.f32.mrf.mxu1  ;;  %v3512_v60 = vadd.f32 %v1511_v55, %v1399_v57 }
 0x132   : > { %v3514_v61 = vpop.f32.mrf.mxu0 }
 0x133   : > { %v3516_v0 = vpop.f32.mrf.mxu1 }
 0x134   : > { %v1406_v1 = vpop.f32.mrf.mxu0 }
 0x135   : > { %v1519_v2 = vpop.f32.mrf.mxu1  ;;  %v1407_v3 = vadd.f32 %v1406_v1, %v3435_v62 }
 0x136   : > { %v1408_v4 = vpop.f32.mrf.mxu0 }
 0x137   : > { %v1521_v6 = vpop.f32.mrf.mxu1  ;;  %v3519_v12 = vadd.f32 %v1519_v2, %v1407_v3  ;;  %v1409_v13 = vadd.f32 %v1408_v4, %v3437_v63 }
 0x138   : > { %v3522_v14 = vpop.f32.mrf.mxu0 }
 0x139   : > { %v3524_v15 = vpop.f32.mrf.mxu1  ;;  %v3526_v16 = vadd.f32 %v1521_v6, %v1409_v13  ;;  %v1361_v6 = vadd.f32 %v3443_v7, %v3435_v62 }
 0x13a   : > { %v3528_v17 = vpop.f32.mrf.mxu0 }
 0x13b   : > { %v3530_v18 = vpop.f32.mrf.mxu1 }
 0x13c   : > { %v1416_v20 = vpop.f32.mrf.mxu0 }
 0x13d   : > { %v1529_v23 = vpop.f32.mrf.mxu1  ;;  %v1417_v27 = vadd.f32 %v1416_v20, %v3435_v62 }
 0x13e   : > { %v1418_v28 = vpop.f32.mrf.mxu0 }
 0x13f   : > { %v1531_v29 = vpop.f32.mrf.mxu1  ;;  %v3533_v30 = vadd.f32 %v1529_v23, %v1417_v27  ;;  %v1419_v31 = vadd.f32 %v1418_v28, %v3437_v63  ;;  %v1363_v23 = vadd.f32 %v3449_v10, %v3437_v63 }
 0x140   : > { %v3536_v33 = vpop.f32.mrf.mxu0 }
 0x141   : > { %v3538_v39 = vpop.f32.mrf.mxu1  ;;  %v3540_v40 = vadd.f32 %v1531_v29, %v1419_v31  ;;  %v1474_v29 = vadd.f32 %v3445_v8, %v1361_v6 }
 0x142   : > { %v3542_v41 = vpop.f32.mrf.mxu0 }
 0x143   : > { %v3544_v42 = vpop.f32.mrf.mxu1 }
 0x144   : > { %v1426_v43 = vpop.f32.mrf.mxu0 }
 0x145   : > { %v1539_v45 = vpop.f32.mrf.mxu1  ;;  %v1427_v51 = vadd.f32 %v1426_v43, %v3435_v62 }
 0x146   : > { %v1428_v52 = vpop.f32.mrf.mxu0 }
 0x147   : > { %v1541_v53 = vpop.f32.mrf.mxu1  ;;  %v3547_v54 = vadd.f32 %v1539_v45, %v1427_v51  ;;  %v1429_v55 = vadd.f32 %v1428_v52, %v3437_v63  ;;  %v1476_v52 = vadd.f32 %v3451_v11, %v1363_v23 }
 0x148   : > { %v3550_v57 = vpop.f32.mrf.mxu0 }
 0x149   : > { %3696 = vst [vmem:[#allocation2_spill] sm:$0xff] %v3547_v54  ;;  %v3552_v1 = vpop.f32.mrf.mxu1  ;;  %v3554_v2 = vadd.f32 %v1541_v53, %v1429_v55 }
 0x14a   : > { %3697 = vst [vmem:[#allocation3_spill] sm:$0xff] %v3552_v1  ;;  %v3556_v3 = vpop.f32.mrf.mxu0 }
 0x14b   : > { %3698 = vst [vmem:[#allocation4_spill] sm:$0xff] %v3554_v2  ;;  %3699 = vst [vmem:[#allocation5_spill] sm:$0xff] %v3556_v3  ;;  %v3558_v4 = vpop.f32.mrf.mxu1 }
 0x14c   : > { %3700 = vst [vmem:[#allocation6_spill] sm:$0xff] %v3558_v4  ;;  %v1582_v13 = vpop.f32.mrf.mxu0  ;;  %v1371_v4 = vadd.f32 %v3463_v21, %v3435_v62 }
 0x14d   : > { %v1695_v20 = vpop.f32.mrf.mxu1  ;;  %v1583_v43 = vadd.f32 %v1582_v13, %v3440_v5 }
 0x14e   : > { %v1584_v27 = vpop.f32.mrf.mxu0  ;;  %v1484_v11 = vadd.f32 %v3465_v22, %v1371_v4 }
 0x14f   : > { %v1697_v28 = vpop.f32.mrf.mxu1  ;;  %v1585_v31 = vadd.f32 %v1584_v27, %v3447_v9  ;;  %v1696_v1 = vadd.f32 %v1695_v20, %v1583_v43  ;;  %v1373_v9 = vadd.f32 %v3472_v25, %v3437_v63 }
 0x150   : > { %v1586_v45 = vpop.f32.mrf.mxu0 }
 0x151   : > { %v1699_v51 = vpop.f32.mrf.mxu1  ;;  %v1587_v53 = vadd.f32 %v1586_v45, %v1474_v29  ;;  %v1698_v54 = vadd.f32 %v1697_v28, %v1585_v31  ;;  %v1774_v21 = vmax.f32 %v1696_v1, 0.0  ;;  %v1486_v43 = vadd.f32 %v3474_v26, %v1373_v9 }
 0x152   : > { %v1588_v55 = vpop.f32.mrf.mxu0 }
 0x153   : > { %v1701_v7 = vpop.f32.mrf.mxu1  ;;  %v1700_v10 = vadd.f32 %v1699_v51, %v1587_v53  ;;  %v1589_v2 = vadd.f32 %v1588_v55, %v1476_v52  ;;  %v1775_v23 = vmax.f32 %v1698_v54, 0.0  ;;  %v1381_v55 = vadd.f32 %v3480_v34, %v3435_v62 }
 0x154   : > { %v1592_v3 = vpop.f32.mrf.mxu0 }
 0x155   : > { %v1705_v8 = vpop.f32.mrf.mxu1  ;;  %v1702_v5 = vadd.f32 %v1701_v7, %v1589_v2  ;;  %v1776_v6 = vmax.f32 %v1700_v10, 0.0  ;;  %v1593_v28 = vadd.f32 %v1592_v3, %v3460_v19  ;;  %v1383_v19 = vadd.f32 %v3486_v37, %v3437_v63 }
 0x156   : > { %v1594_v13 = vpop.f32.mrf.mxu0 }
 0x157   : > { %v1707_v27 = vpop.f32.mrf.mxu1  ;;  %v1777_v29 = vmax.f32 %v1702_v5, 0.0  ;;  %v1595_v45 = vadd.f32 %v1594_v13, %v3470_v24  ;;  %v1806_v25 = vpack.c.bf16 %v1776_v6, %v1774_v21  ;;  %v1706_v24 = vadd.f32 %v1705_v8, %v1593_v28 }
 0x158   : > { %v1596_v31 = vpop.f32.mrf.mxu0  ;;  %v1494_v5 = vadd.f32 %v3482_v35, %v1381_v55 }
 0x159   : > { %v1709_v20 = vpop.f32.mrf.mxu1  ;;  %v1807_v51 = vpack.c.bf16 %v1777_v29, %v1775_v23  ;;  %v1597_v52 = vadd.f32 %v1596_v31, %v1484_v11  ;;  %v1708_v22 = vadd.f32 %v1707_v27, %v1595_v45  ;;  %v1778_v27 = vmax.f32 %v1706_v24, 0.0 }
 0x15a   : > { %v1598_v2 = vpop.f32.mrf.mxu0  ;;  %v1496_v29 = vadd.f32 %v3488_v38, %v1383_v19 }
 0x15b   : > { %v1711_v53 = vpop.f32.mrf.mxu1  ;;  %v1710_v54 = vadd.f32 %v1709_v20, %v1597_v52  ;;  %v1599_v4 = vadd.f32 %v1598_v2, %v1486_v43  ;;  %1989 = vmatprep.mubr.bf16.mxu0 %v1807_v51  ;;  %v1779_v6 = vmax.f32 %v1708_v22, 0.0  ;;  %v1391_v20 = vadd.f32 %v3494_v46, %v3435_v62 }
 0x15c   : > { %v1602_v1 = vpop.f32.mrf.mxu0  ;;  %1990 = vmatmul.mubr.bf16.vlgmr.msra.gmra.mxu0 %v1806_v25 }
 0x15d   : > { %v1715_v7 = vpop.f32.mrf.mxu1  ;;  %v1712_v26 = vadd.f32 %v1711_v53, %v1599_v4  ;;  %v1780_v3 = vmax.f32 %v1710_v54, 0.0  ;;  %v1603_v11 = vadd.f32 %v1602_v1, %v3477_v32  ;;  %v1393_v32 = vadd.f32 %v3500_v49, %v3437_v63 }
 0x15e   : > { %v1604_v10 = vpop.f32.mrf.mxu0  ;;  %v1504_v22 = vadd.f32 %v3496_v47, %v1391_v20 }
 0x15f   : > { %v1717_v9 = vpop.f32.mrf.mxu1  ;;  %v1781_v13 = vmax.f32 %v1712_v26, 0.0  ;;  %v1605_v34 = vadd.f32 %v1604_v10, %v3484_v36  ;;  %v1808_v37 = vpack.c.bf16 %v1780_v3, %v1778_v27  ;;  %v1716_v36 = vadd.f32 %v1715_v7, %v1603_v11 }
 0x160   : > { %v1606_v8 = vpop.f32.mrf.mxu0  ;;  %v1506_v26 = vadd.f32 %v3502_v50, %v1393_v32  ;;  %v1411_v32 = vadd.f32 %v3522_v14, %v3435_v62 }
 0x161   : > { %v1719_v23 = vpop.f32.mrf.mxu1  ;;  %v1809_v45 = vpack.c.bf16 %v1781_v13, %v1779_v6  ;;  %v1607_v21 = vadd.f32 %v1606_v8, %v1494_v5  ;;  %v1718_v35 = vadd.f32 %v1717_v9, %v1605_v34  ;;  %v1782_v24 = vmax.f32 %v1716_v36, 0.0 }
 0x162   : > { %v1608_v28 = vpop.f32.mrf.mxu0  ;;  %v1401_v6 = vadd.f32 %v3508_v58, %v3435_v62 }
 0x163   : > { %v1721_v31 = vpop.f32.mrf.mxu1  ;;  %v1720_v43 = vadd.f32 %v1719_v23, %v1607_v21  ;;  %v1609_v51 = vadd.f32 %v1608_v28, %v1496_v29  ;;  %1997 = vmatprep.mubr.bf16.mxu0 %v1809_v45  ;;  %v1783_v54 = vmax.f32 %v1718_v35, 0.0 }
 0x164   : > { %v1612_v52 = vpop.f32.mrf.mxu0  ;;  %1998 = vmatmul.mubr.bf16.gmra.mxu0 %v1808_v37  ;;  %v1514_v45 = vadd.f32 %v3510_v59, %v1401_v6 }
 0x165   : > { %v1725_v25 = vpop.f32.mrf.mxu1  ;;  %v1722_v38 = vadd.f32 %v1721_v31, %v1609_v51  ;;  %v1784_v2 = vmax.f32 %v1720_v43, 0.0  ;;  %v1613_v1 = vadd.f32 %v1612_v52, %v3491_v44  ;;  %v1403_v44 = vadd.f32 %v3514_v61, %v3437_v63 }
 0x166   : > { %v1614_v53 = vpop.f32.mrf.mxu0 }
 0x167   : > { %v1727_v55 = vpop.f32.mrf.mxu1  ;;  %v1785_v4 = vmax.f32 %v1722_v38, 0.0  ;;  %v1615_v46 = vadd.f32 %v1614_v53, %v3498_v48  ;;  %v1810_v49 = vpack.c.bf16 %v1784_v2, %v1782_v24  ;;  %v1726_v48 = vadd.f32 %v1725_v25, %v1613_v1 }
 0x168   : > { %v1616_v7 = vpop.f32.mrf.mxu0  ;;  %v1516_v43 = vadd.f32 %v3516_v0, %v1403_v44 }
 0x169   : > { %v1729_v19 = vpop.f32.mrf.mxu1  ;;  %v1811_v3 = vpack.c.bf16 %v1785_v4, %v1783_v54  ;;  %v1617_v10 = vadd.f32 %v1616_v7, %v1504_v22  ;;  %v1728_v47 = vadd.f32 %v1727_v55, %v1615_v46  ;;  %v1786_v28 = vmax.f32 %v1726_v48, 0.0 }
 0x16a   : > { %v1618_v9 = vpop.f32.mrf.mxu0  ;;  %v1524_v46 = vadd.f32 %v3524_v15, %v1411_v32 }
 0x16b   : > { %v1731_v5 = vpop.f32.mrf.mxu1  ;;  %v1730_v13 = vadd.f32 %v1729_v19, %v1617_v10  ;;  %v1619_v34 = vadd.f32 %v1618_v9, %v1506_v26  ;;  %2005 = vmatprep.mubr.bf16.mxu0 %v1811_v3  ;;  %v1787_v21 = vmax.f32 %v1728_v47, 0.0  ;;  %v1421_v47 = vadd.f32 %v3536_v33, %v3435_v62 }
 0x16c   : > { %v1622_v27 = vpop.f32.mrf.mxu0  ;;  %2006 = vmatmul.mubr.bf16.gmra.mxu0 %v1810_v49 }
 0x16d   : > { %v1735_v11 = vpop.f32.mrf.mxu1  ;;  %v1732_v50 = vadd.f32 %v1731_v5, %v1619_v34  ;;  %v1788_v8 = vmax.f32 %v1730_v13, 0.0  ;;  %v1623_v31 = vadd.f32 %v1622_v27, %v3505_v56  ;;  %v1413_v56 = vadd.f32 %v3528_v17, %v3437_v63 }
 0x16e   : > { %v1624_v23 = vpop.f32.mrf.mxu0 }
 0x16f   : > { %v1737_v29 = vpop.f32.mrf.mxu1  ;;  %v1789_v37 = vmax.f32 %v1732_v50, 0.0  ;;  %v1625_v58 = vadd.f32 %v1624_v23, %v3512_v60  ;;  %v1812_v61 = vpack.c.bf16 %v1788_v8, %v1786_v28  ;;  %v1736_v60 = vadd.f32 %v1735_v11, %v1623_v31 }
 0x170   : > { %v1626_v20 = vpop.f32.mrf.mxu0  ;;  %v1526_v10 = vadd.f32 %v3530_v18, %v1413_v56  ;;  %v1534_v8 = vadd.f32 %v3538_v39, %v1421_v47 }
 0x171   : > { %v1739_v35 = vpop.f32.mrf.mxu1  ;;  %v1813_v51 = vpack.c.bf16 %v1789_v37, %v1787_v21  ;;  %v1627_v36 = vadd.f32 %v1626_v20, %v1514_v45  ;;  %v1738_v59 = vadd.f32 %v1737_v29, %v1625_v58  ;;  %v1790_v7 = vmax.f32 %v1736_v60, 0.0  ;;  %v3702_v60 = vld [vmem:[#allocation3_spill] sm:$0xff] }
 0x172   : > { %v1628_v52 = vpop.f32.mrf.mxu0 }
 0x173   : > { %v1741_v25 = vpop.f32.mrf.mxu1  ;;  %v1740_v38 = vadd.f32 %v1739_v35, %v1627_v36  ;;  %v1629_v2 = vadd.f32 %v1628_v52, %v1516_v43  ;;  %2013 = vmatprep.mubr.bf16.mxu0 %v1813_v51  ;;  %v1791_v24 = vmax.f32 %v1738_v59, 0.0  ;;  %v1431_v51 = vadd.f32 %v3550_v57, %v3435_v62  ;;  %v3703_v62 = vld [vmem:[#allocation4_spill] sm:$0xff] }
 0x174   : > { %v1632_v53 = vpop.f32.mrf.mxu0  ;;  %2014 = vmatmul.mubr.bf16.gmra.mxu0 %v1812_v61 }
 0x175   : > { %v1745_v55 = vpop.f32.mrf.mxu1  ;;  %v1742_v0 = vadd.f32 %v1741_v25, %v1629_v2  ;;  %v1792_v22 = vmax.f32 %v1740_v38, 0.0  ;;  %v1633_v19 = vadd.f32 %v1632_v53, %v3519_v12  ;;  %v1423_v12 = vadd.f32 %v3542_v41, %v3437_v63 }
 0x176   : > { %v1634_v54 = vpop.f32.mrf.mxu0  ;;  %v1544_v53 = vadd.f32 %v3702_v60, %v1431_v51 }
 0x177   : > { %v1747_v4 = vpop.f32.mrf.mxu1  ;;  %v1793_v1 = vmax.f32 %v1742_v0, 0.0  ;;  %v1635_v14 = vadd.f32 %v1634_v54, %v3526_v16  ;;  %v1814_v17 = vpack.c.bf16 %v1792_v22, %v1790_v7  ;;  %v1746_v16 = vadd.f32 %v1745_v55, %v1633_v19  ;;  %v3704_v22 = vld [vmem:[#allocation2_spill] sm:$0xff] }
 0x178   : > { %v1636_v26 = vpop.f32.mrf.mxu0  ;;  %v1536_v28 = vadd.f32 %v3544_v42, %v1423_v12  ;;  %v2915_v12 = vld [vmem:[%s3693_s5 + $0x8] sm:$0xff]  }
 0x179   : > { %v1749_v3 = vpop.f32.mrf.mxu1  ;;  %v1815_v49 = vpack.c.bf16 %v1793_v1, %v1791_v24  ;;  %v1637_v9 = vadd.f32 %v1636_v26, %v1524_v46  ;;  %v1748_v15 = vadd.f32 %v1747_v4, %v1635_v14  ;;  %v1794_v45 = vmax.f32 %v1746_v16, 0.0  ;;  %v3705_v24 = vld [vmem:[#allocation6_spill] sm:$0xff] }
 0x17a   : > { %v1638_v5 = vpop.f32.mrf.mxu0  ;;  %v2912_v16 = vld [vmem:[%s3693_s5 + $0x20] sm:$0xff]  }
 0x17b   : > { %v1751_v6 = vpop.f32.mrf.mxu1  ;;  %v1750_v13 = vadd.f32 %v1749_v3, %v1637_v9  ;;  %v1639_v34 = vadd.f32 %v1638_v5, %v1526_v10  ;;  %2021 = vmatprep.mubr.bf16.mxu0 %v1815_v49  ;;  %v1795_v23 = vmax.f32 %v1748_v15, 0.0  ;;  %2609 = vmatprep.subr.bf16.mxu1 %v2912_v16 }
 0x17c   : > { %v1642_v48 = vpop.f32.mrf.mxu0  ;;  %2022 = vmatmul.mubr.bf16.gmra.mxu0 %v1814_v17  ;;  %2610 = vmatpush3.bf16.msra.mxu1 %v2912_v16 }
 0x17d   : > { %v1755_v27 = vpop.f32.mrf.mxu1  ;;  %v1752_v18 = vadd.f32 %v1751_v6, %v1639_v34  ;;  %v1796_v11 = vmax.f32 %v1750_v13, 0.0  ;;  %v1643_v21 = vadd.f32 %v1642_v48, %v3533_v30  ;;  %v3701_v30 = vld [vmem:[#allocation5_spill] sm:$0xff] }
 0x17e   : > { %v1644_v44 = vpop.f32.mrf.mxu0  ;;  %v1433_v32 = vadd.f32 %v3701_v30, %v3437_v63  ;;  %v2913_v48 = vld [vmem:[%s3693_s5 + $0x18] sm:$0xff]  }
 0x17f   : > { %v1757_v50 = vpop.f32.mrf.mxu1  ;;  %v1797_v29 = vmax.f32 %v1752_v18, 0.0  ;;  %v1645_v33 = vadd.f32 %v1644_v44, %v3540_v40  ;;  %v1816_v41 = vpack.c.bf16 %v1796_v11, %v1794_v45  ;;  %v1756_v40 = vadd.f32 %v1755_v27, %v1643_v21  ;;  %2611 = vmatprep.subr.bf16.mxu1 %v2913_v48  ;;  %v2914_v27 = vld [vmem:[%s3693_s5 + $0x10] sm:$0xff]   ;;  %v2916_v18 = vld [vmem:[%s3693_s5] sm:$0xff]  }
 0x180   : > { %v1646_v37 = vpop.f32.mrf.mxu0  ;;  %v1546_v1 = vadd.f32 %v3705_v24, %v1433_v32  ;;  %2612 = vmatpush3.bf16.msra.mxu1 %v2913_v48 }
 0x181   : > { %v1759_v58 = vpop.f32.mrf.mxu1  ;;  %v1817_v31 = vpack.c.bf16 %v1797_v29, %v1795_v23  ;;  %v1647_v20 = vadd.f32 %v1646_v37, %v1534_v8  ;;  %v1758_v39 = vadd.f32 %v1757_v50, %v1645_v33  ;;  %v1798_v0 = vmax.f32 %v1756_v40, 0.0  ;;  %2613 = vmatprep.subr.bf16.mxu1 %v2914_v27  ;;  %v3642_v8 = vld [vmem:[%s3692_s4] ss:$0 sm:$0xff] }
 0x182   : > { %v1648_v35 = vpop.f32.mrf.mxu0 }
 0x183   : > { %v1761_v43 = vpop.f32.mrf.mxu1  ;;  %v1760_v36 = vadd.f32 %v1759_v58, %v1647_v20  ;;  %v1649_v61 = vadd.f32 %v1648_v35, %v1536_v28  ;;  %2029 = vmatprep.mubr.bf16.mxu0 %v1817_v31  ;;  %v1799_v55 = vmax.f32 %v1758_v39, 0.0 }
 0x184   : > { %v1652_v52 = vpop.f32.mrf.mxu0  ;;  %2030 = vmatmul.mubr.bf16.gmra.mxu0 %v1816_v41  ;;  %2614 = vmatpush3.bf16.msra.mxu1 %v2914_v27 }
 0x185   : > { %v1765_v25 = vpop.f32.mrf.mxu1  ;;  %v1762_v42 = vadd.f32 %v1761_v43, %v1649_v61  ;;  %v1800_v59 = vmax.f32 %v1760_v36, 0.0  ;;  %v1653_v54 = vadd.f32 %v1652_v52, %v3704_v22  ;;  %2615 = vmatprep.subr.bf16.mxu1 %v2915_v12 }
 0x186   : > { %v1654_v38 = vpop.f32.mrf.mxu0 }
 0x187   : > { %v1767_v2 = vpop.f32.mrf.mxu1  ;;  %v1801_v56 = vmax.f32 %v1762_v42, 0.0  ;;  %v1655_v57 = vadd.f32 %v1654_v38, %v3703_v62  ;;  %v1818_v63 = vpack.c.bf16 %v1800_v59, %v1798_v0  ;;  %v1766_v49 = vadd.f32 %v1765_v25, %v1653_v54 }
 0x188   : > { %v1656_v4 = vpop.f32.mrf.mxu0  ;;  %2616 = vmatpush3.bf16.msra.mxu1 %v2915_v12 }
 0x189   : > { %v1769_v46 = vpop.f32.mrf.mxu1  ;;  %v1819_v14 = vpack.c.bf16 %v1801_v56, %v1799_v55  ;;  %v1657_v7 = vadd.f32 %v1656_v4, %v1544_v53  ;;  %v1768_v26 = vadd.f32 %v1767_v2, %v1655_v57  ;;  %v1802_v15 = vmax.f32 %v1766_v49, 0.0  ;;  %2617 = vmatprep.subr.bf16.mxu1 %v2916_v18 }
 0x18a   : > { %v1658_v19 = vpop.f32.mrf.mxu0 }
 0x18b   : > { %v1770_v3 = vadd.f32 %v1769_v46, %v1657_v7  ;;  %v1659_v10 = vadd.f32 %v1658_v19, %v1546_v1  ;;  %2037 = vmatprep.mubr.bf16.mxu0 %v1819_v14  ;;  %v1771_v9 = vpop.f32.mrf.mxu1  ;;  %v1803_v6 = vmax.f32 %v1768_v26, 0.0 }
 0x18c   : > { %2038 = vmatmul.mubr.bf16.gmra.mxu0 %v1818_v63  ;;  %2618 = vmatpush3.bf16.msra.mxu1 %v2916_v18 }
 0x18d   : > { %v1772_v17 = vadd.f32 %v1771_v9, %v1659_v10  ;;  %v1804_v5 = vmax.f32 %v1770_v3, 0.0 }
 0x18f   : > { %v1805_v47 = vmax.f32 %v1772_v17, 0.0  ;;  %v1820_v34 = vpack.c.bf16 %v1804_v5, %v1802_v15 }
 0x191   : > { %v1821_v13 = vpack.c.bf16 %v1805_v47, %v1803_v6 }
 0x193   : > { %2045 = vmatprep.mubr.bf16.mxu0 %v1821_v13 }
 0x194   : > { %2046 = vmatmul.mubr.bf16.gmra.mxu0 %v1820_v34 }
 0x21c   : > { %v2539_v11 = vpop.f32.mrf.mxu0 }
 0x21e   : > { %v2540_v44 = vpop.f32.mrf.mxu0 }
 0x21f   : > { %v2541_v50 = vadd.f32 %v2540_v44, %v2539_v11 }
 0x220   : > { %v2542_v23 = vpop.f32.mrf.mxu0 }
 0x221   : > { %v1992_v33 = vadd.f32 %v2541_v50, %v3642_v8 }
 0x222   : > { %v2543_v29 = vpop.f32.mrf.mxu0 }
 0x223   : > { %v2544_v45 = vadd.f32 %v2543_v29, %v2542_v23  ;;  %v2054_v28 = vmax.f32 %v1992_v33, 0.0 }
 0x224   : > { %v2545_v21 = vpop.f32.mrf.mxu0 }
 0x225   : > { %v1995_v37 = vadd.f32 %v2544_v45, %v3642_v8 }
 0x226   : > { %v2546_v58 = vpop.f32.mrf.mxu0 }
 0x227   : > { %v2055_v31 = vmax.f32 %v1995_v37, 0.0  ;;  %v2547_v20 = vadd.f32 %v2546_v58, %v2545_v21 }
 0x228   : > { %v2548_v41 = vpop.f32.mrf.mxu0 }
 0x229   : > { %v2070_v35 = vpack.c.bf16 %v2055_v31, %v2054_v28  ;;  %v2000_v51 = vadd.f32 %v2547_v20, %v3642_v8 }
 0x22a   : > { %v2549_v43 = vpop.f32.mrf.mxu0 }
 0x22b   : > { %v2550_v39 = vadd.f32 %v2549_v43, %v2548_v41  ;;  %2619 = vmatprep.mubr.bf16.mxu1 %v2070_v35  ;;  %v2056_v52 = vmax.f32 %v2000_v51, 0.0 }
 0x22c   : > { %v2551_v36 = vpop.f32.mrf.mxu0 }
 0x22d   : > { %v2003_v61 = vadd.f32 %v2550_v39, %v3642_v8 }
 0x22e   : > { %v2552_v40 = vpop.f32.mrf.mxu0 }
 0x22f   : > { %v2057_v25 = vmax.f32 %v2003_v61, 0.0  ;;  %v2553_v30 = vadd.f32 %v2552_v40, %v2551_v36 }
 0x230   : > { %v2554_v32 = vpop.f32.mrf.mxu0 }
 0x231   : > { %v2071_v42 = vpack.c.bf16 %v2057_v25, %v2056_v52  ;;  %v2008_v38 = vadd.f32 %v2553_v30, %v3642_v8 }
 0x232   : > { %v2555_v59 = vpop.f32.mrf.mxu0 }
 0x233   : > { %v2556_v2 = vadd.f32 %v2555_v59, %v2554_v32  ;;  %2620 = vmatmul.mubr.bf16.vlgmr.msra.gmra.mxu1 %v2071_v42  ;;  %v2058_v56 = vmax.f32 %v2008_v38, 0.0  ;;  %v2512_v42 = vld [vmem:[%s3694_s6] ss:$0 sm:$0xff] }
 0x234   : > { %v2557_v60 = vpop.f32.mrf.mxu0 }
 0x235   : > { %v2011_v53 = vadd.f32 %v2556_v2, %v3642_v8 }
 0x236   : > { %v2558_v55 = vpop.f32.mrf.mxu0 }
 0x237   : > { %v2059_v62 = vmax.f32 %v2011_v53, 0.0  ;;  %v2559_v57 = vadd.f32 %v2558_v55, %v2557_v60 }
 0x238   : > { %v2560_v0 = vpop.f32.mrf.mxu0 }
 0x239   : > { %v2072_v22 = vpack.c.bf16 %v2059_v62, %v2058_v56  ;;  %v2016_v4 = vadd.f32 %v2559_v57, %v3642_v8 }
 0x23a   : > { %v2561_v54 = vpop.f32.mrf.mxu0 }
 0x23b   : > { %v2562_v46 = vadd.f32 %v2561_v54, %v2560_v0  ;;  %2623 = vmatprep.mubr.bf16.mxu1 %v2072_v22  ;;  %v2060_v7 = vmax.f32 %v2016_v4, 0.0 }
 0x23c   : > { %v2563_v24 = vpop.f32.mrf.mxu0 }
 0x23d   : > { %v2019_v1 = vadd.f32 %v2562_v46, %v3642_v8 }
 0x23e   : > { %v2564_v14 = vpop.f32.mrf.mxu0 }
 0x23f   : > { %v2061_v63 = vmax.f32 %v2019_v1, 0.0  ;;  %v2565_v19 = vadd.f32 %v2564_v14, %v2563_v24 }
 0x240   : > { %v2566_v26 = vpop.f32.mrf.mxu0 }
 0x241   : > { %v2073_v3 = vpack.c.bf16 %v2061_v63, %v2060_v7  ;;  %v2024_v49 = vadd.f32 %v2565_v19, %v3642_v8 }
 0x242   : > { %v2567_v10 = vpop.f32.mrf.mxu0 }
 0x243   : > { %v2568_v9 = vadd.f32 %v2567_v10, %v2566_v26  ;;  %2624 = vmatmul.mubr.bf16.gmra.mxu1 %v2073_v3  ;;  %v2062_v47 = vmax.f32 %v2024_v49, 0.0 }
 0x244   : > { %v2569_v17 = vpop.f32.mrf.mxu0 }
 0x245   : > { %v2027_v5 = vadd.f32 %v2568_v9, %v3642_v8 }
 0x246   : > { %v2570_v6 = vpop.f32.mrf.mxu0 }
 0x247   : > { %v2063_v15 = vmax.f32 %v2027_v5, 0.0  ;;  %v2571_v13 = vadd.f32 %v2570_v6, %v2569_v17 }
 0x248   : > { %v2572_v34 = vpop.f32.mrf.mxu0 }
 0x249   : > { %v2074_v16 = vpack.c.bf16 %v2063_v15, %v2062_v47  ;;  %v2032_v27 = vadd.f32 %v2571_v13, %v3642_v8 }
 0x24a   : > { %v2573_v48 = vpop.f32.mrf.mxu0 }
 0x24b   : > { %v2574_v12 = vadd.f32 %v2573_v48, %v2572_v34  ;;  %2627 = vmatprep.mubr.bf16.mxu1 %v2074_v16  ;;  %v2064_v50 = vmax.f32 %v2032_v27, 0.0 }
 0x24c   : > { %v2575_v18 = vpop.f32.mrf.mxu0 }
 0x24d   : > { %v2035_v11 = vadd.f32 %v2574_v12, %v3642_v8 }
 0x24e   : > { %v2576_v44 = vpop.f32.mrf.mxu0 }
 0x24f   : > { %v2065_v23 = vmax.f32 %v2035_v11, 0.0  ;;  %v2577_v29 = vadd.f32 %v2576_v44, %v2575_v18 }
 0x250   : > { %v2578_v33 = vpop.f32.mrf.mxu0 }
 0x251   : > { %v2075_v45 = vpack.c.bf16 %v2065_v23, %v2064_v50  ;;  %v2040_v37 = vadd.f32 %v2577_v29, %v3642_v8 }
 0x252   : > { %v2579_v21 = vpop.f32.mrf.mxu0 }
 0x253   : > { %v2580_v58 = vadd.f32 %v2579_v21, %v2578_v33  ;;  %2628 = vmatmul.mubr.bf16.gmra.mxu1 %v2075_v45  ;;  %v2066_v41 = vmax.f32 %v2040_v37, 0.0 }
 0x254   : > { %v2581_v28 = vpop.f32.mrf.mxu0 }
 0x255   : > { %v2043_v31 = vadd.f32 %v2580_v58, %v3642_v8 }
 0x256   : > { %v2582_v20 = vpop.f32.mrf.mxu0 }
 0x257   : > { %v2067_v35 = vmax.f32 %v2043_v31, 0.0  ;;  %v2583_v43 = vadd.f32 %v2582_v20, %v2581_v28 }
 0x258   : > { %v2584_v51 = vpop.f32.mrf.mxu0 }
 0x259   : > { %v2076_v39 = vpack.c.bf16 %v2067_v35, %v2066_v41  ;;  %v2048_v61 = vadd.f32 %v2583_v43, %v3642_v8 }
 0x25a   : > { %v2585_v36 = vpop.f32.mrf.mxu0 }
 0x25b   : > { %v2586_v40 = vadd.f32 %v2585_v36, %v2584_v51  ;;  %2631 = vmatprep.mubr.bf16.mxu1 %v2076_v39  ;;  %v2068_v25 = vmax.f32 %v2048_v61, 0.0 }
 0x25d   : > { %v2051_v52 = vadd.f32 %v2586_v40, %v3642_v8 }
 0x25f   : > { %v2069_v30 = vmax.f32 %v2051_v52, 0.0 }
 0x261   : > { %v2077_v32 = vpack.c.bf16 %v2069_v30, %v2068_v25 }
 0x263   : > { %2632 = vmatmul.mubr.bf16.gmra.mxu1 %v2077_v32 }
 0x2f3   : > { %v2621_v8 = vpop.f32.mrf.mxu1 }
 0x2f4   : > { %v2192_v59 = vadd.f32 %v2621_v8, %v2512_v42 }
 0x2f5   : > { %v2183_v38 = vpop.f32.mrf.mxu1 }
 0x2f6   : > { %2248 = vst [vmem:[%s3667_s23 + $0x10] sm:$0xff] %v2192_v59  ;;  %v2184_v2 = vadd.f32 %v2512_v42, %v2183_v38 }
 0x2f7   : > { %v2622_v60 = vpop.f32.mrf.mxu1 }
 0x2f8   : > { %2246 = vst [vmem:[%s3667_s23] sm:$0xff] %v2184_v2  ;;  %v2195_v53 = vadd.f32 %v2622_v60, %v2512_v42 }
 0x2f9   : > { %v2186_v55 = vpop.f32.mrf.mxu1 }
 0x2fa   : > { %2249 = vst [vmem:[%s3667_s23 + $0x18] sm:$0xff] %v2195_v53  ;;  %v2187_v56 = vadd.f32 %v2512_v42, %v2186_v55 }
 0x2fc   : > { %2247 = vst [vmem:[%s3667_s23 + $0x8] sm:$0xff] %v2187_v56 }
 0x303   : > { %v2625_v62 = vpop.f32.mrf.mxu1 }
 0x304   : > { %v2208_v57 = vadd.f32 %v2625_v62, %v2512_v42 }
 0x305   : > { %v2199_v0 = vpop.f32.mrf.mxu1 }
 0x306   : > { %2252 = vst [vmem:[%s3667_s23 + $0x30] sm:$0xff] %v2208_v57  ;;  %v2200_v22 = vadd.f32 %v2512_v42, %v2199_v0 }
 0x307   : > { %v2626_v54 = vpop.f32.mrf.mxu1 }
 0x308   : > { %2250 = vst [vmem:[%s3667_s23 + $0x20] sm:$0xff] %v2200_v22  ;;  %v2211_v4 = vadd.f32 %v2626_v54, %v2512_v42 }
 0x309   : > { %v2202_v46 = vpop.f32.mrf.mxu1 }
 0x30a   : > { %2253 = vst [vmem:[%s3667_s23 + $0x38] sm:$0xff] %v2211_v4  ;;  %v2203_v24 = vadd.f32 %v2512_v42, %v2202_v46 }
 0x30c   : > { %2251 = vst [vmem:[%s3667_s23 + $0x28] sm:$0xff] %v2203_v24 }
 0x313   : > { %v2629_v1 = vpop.f32.mrf.mxu1 }
 0x314   : > { %v2224_v14 = vadd.f32 %v2629_v1, %v2512_v42 }
 0x315   : > { %v2215_v7 = vpop.f32.mrf.mxu1 }
 0x316   : > { %2256 = vst [vmem:[%s3667_s23 + $0x50] sm:$0xff] %v2224_v14  ;;  %v2216_v63 = vadd.f32 %v2512_v42, %v2215_v7 }
 0x317   : > { %v2630_v19 = vpop.f32.mrf.mxu1 }
 0x318   : > { %2254 = vst [vmem:[%s3667_s23 + $0x40] sm:$0xff] %v2216_v63  ;;  %v2227_v26 = vadd.f32 %v2630_v19, %v2512_v42 }
 0x319   : > { %v2218_v3 = vpop.f32.mrf.mxu1 }
 0x31a   : > { %2257 = vst [vmem:[%s3667_s23 + $0x58] sm:$0xff] %v2227_v26  ;;  %v2219_v10 = vadd.f32 %v2512_v42, %v2218_v3 }
 0x31c   : > { %2255 = vst [vmem:[%s3667_s23 + $0x48] sm:$0xff] %v2219_v10 }
 0x323   : > { %v2633_v49 = vpop.f32.mrf.mxu1 }
 0x324   : > { %v2240_v9 = vadd.f32 %v2633_v49, %v2512_v42 }
 0x325   : > { %v2231_v17 = vpop.f32.mrf.mxu1 }
 0x326   : > { %2260 = vst [vmem:[%s3667_s23 + $0x70] sm:$0xff] %v2240_v9  ;;  %v2232_v5 = vadd.f32 %v2512_v42, %v2231_v17 }
 0x327   : > { %v2634_v6 = vpop.f32.mrf.mxu1 }
 0x328   : > { %2258 = vst [vmem:[%s3667_s23 + $0x60] sm:$0xff] %v2232_v5  ;;  %v2243_v47 = vadd.f32 %v2634_v6, %v2512_v42 }
 0x329   : > { %v2234_v15 = vpop.f32.mrf.mxu1 }
 0x32a   : > { %2261 = vst [vmem:[%s3667_s23 + $0x78] sm:$0xff] %v2243_v47  ;;  %v2235_v13 = vadd.f32 %v2512_v42, %v2234_v15 }
 0x32c   : > { %2259 = vst [vmem:[%s3667_s23 + $0x68] sm:$0xff] %v2235_v13 }
 0x32d PF: > { %s17_s24 = sadd.s32 1, %s2923_s24  }
 0x32e   : > { %p14_p4 = scmp.ge.s32.totalorder %s17_s24, 4  }
 0x330   :  { %16 = sbr.rel (!%p14_p4) target bundleno = 1 (0x1), region = 78 }

</bundles_post_ra>
